<compile_context>
chip_gen: v7x
topology: tpu7x:2x2x1
jax: 0.10.0
libtpu: 0.0.40
codegen_flags: <defaults>
</compile_context>

<pallas_src>
import math

import jax
import jax.numpy as jnp
import numpy as np
from jax.experimental import pallas as pl
from jax.experimental.pallas import tpu as pltpu


def _dot(x, w):
    """bf16 operands, f32 accumulation: single-pass native MXU matmul."""
    return jnp.dot(x.astype(jnp.bfloat16), w, preferred_element_type=jnp.float32)


def kalmannet_seq_kernel(
    # streamed / per-batch-group inputs
    obs_ref, post0_ref, prior0_ref, h0_ref,
    # VMEM-resident weights (bf16 matrices, f32 biases)
    Ft_ref, Ht_ref,
    w1a_ref, w1b_ref, b1_ref,
    wi_ref, bi_ref, wh_ref, bh_ref,
    w2_ref, b2_ref, w3_ref, b3_ref,
    pool_ref,
    # outputs
    states_ref, prior_out_ref, h_out_ref,
    # VMEM scratch: carried filter state for the current batch group
    post_s, prior_s, h_s,
):
    t = pl.program_id(1)
    eps = 1e-12

    # New batch group (t == 0): load its initial filter state into the carry.
    @pl.when(t == 0)
    def _init():
        post_s[...] = post0_ref[...]
        prior_s[...] = prior0_ref[...]
        h_s[...] = h0_ref[...]

    y = obs_ref[0]            # (B, O)   observation at time step t
    post = post_s[...]        # (B, S)   previous posterior
    prior = prior_s[...]      # (B, S)   previous prior
    h = h_s[...]              # (B, Hgp) GRU hidden state

    # ---- prediction step: x_prior = F x_post ; y_prior = H x_prior ----
    prior_new = _dot(post, Ft_ref[...])           # (B, S)
    obs_prior = _dot(prior_new, Ht_ref[...])      # (B, O)

    # ---- L2-normalized innovation / forward-update features (f32, VPU) ----
    innov = y - obs_prior
    innov_n = innov / jnp.maximum(
        jnp.sqrt(jnp.sum(innov * innov, axis=-1, keepdims=True)), eps)
    fwd = post - prior
    fwd_n = fwd / jnp.maximum(
        jnp.sqrt(jnp.sum(fwd * fwd, axis=-1, keepdims=True)), eps)

    # ---- linear layer 1 + ReLU (torch.cat realized as a 2-way split matmul) ----
    l1 = jnp.maximum(
        _dot(innov_n, w1a_ref[...]) + _dot(fwd_n, w1b_ref[...]) + b1_ref[...],
        0.0)                                      # (B, H1p)

    # ---- single-step GRU, gates fused: [r | z | n] (PyTorch gate order) ----
    gi = _dot(l1, wi_ref[...]) + bi_ref[...]      # (B, 3*Hgp)
    gh = _dot(h, wh_ref[...]) + bh_ref[...]       # (B, 3*Hgp)
    hg = h.shape[-1]                              # Hgp (128-aligned slices)
    r = jax.nn.sigmoid(gi[:, :hg] + gh[:, :hg])
    z = jax.nn.sigmoid(gi[:, hg:2 * hg] + gh[:, hg:2 * hg])
    n = jnp.tanh(gi[:, 2 * hg:] + r * gh[:, 2 * hg:])
    h_new = (1.0 - z) * n + z * h                 # (B, Hgp)

    # ---- linear layer 2 + ReLU, linear layer 3 -> flat Kalman gain ----
    l2 = jnp.maximum(_dot(h_new, w2_ref[...]) + b2_ref[...], 0.0)   # (B, H2p)
    gain = _dot(l2, w3_ref[...]) + b3_ref[...]                      # (B, S*O)

    # ---- x_post = x_prior + reshape(gain, (S, O)) @ innovation ----
    # gain[:, s*O + o] pairs with innov[:, o]: lane-tile the innovation (VPU)
    # and sum each O-sized lane group with one tiny (S*O, S) one-hot matmul.
    s_dim = post.shape[-1]
    prod = gain * jnp.tile(innov, (1, s_dim))     # (B, S*O)
    post_new = prior_new + _dot(prod, pool_ref[...])                # (B, S)

    # ---- carry + per-step / final outputs ----
    post_s[...] = post_new
    prior_s[...] = prior_new
    h_s[...] = h_new
    states_ref[0] = post_new
    prior_out_ref[...] = prior_new
    h_out_ref[...] = h_new


def kalmannet_estimate(obs, post0, prior0, h0, params, *, batch_block=8):
    """Run the full KalmanNet recursion over a (T, B, O) observation sequence.

    Equivalent to KalmanNetSimple.estimate_state_from_observations run for B
    independent sequences (the module's rows 1..T of the trajectory; prepending
    the initial posterior row is trivial host-side glue).

    Returns:
      states       (T, B, S)      posterior trajectory
      final_prior  (B, S)         last prior (carried filter state)
      final_hidden (B, Hg_padded) last GRU hidden state (padded lanes are 0)
    """
    T, B, O = obs.shape
    S = post0.shape[-1]
    Hgp = h0.shape[-1]
    assert B % batch_block == 0
    G = B // batch_block
    bb = batch_block

    weights = (params["Ft"], params["Ht"],
               params["w1a"], params["w1b"], params["b1"],
               params["wi"], params["bi"], params["wh"], params["bh"],
               params["w2"], params["b2"], params["w3"], params["b3"],
               params["pool"])

    in_specs = (
        [pl.BlockSpec((1, bb, O), lambda g, t: (t, g, 0)),     # streamed obs
         pl.BlockSpec((bb, S), lambda g, t: (g, 0)),           # initial posterior
         pl.BlockSpec((bb, S), lambda g, t: (g, 0)),           # initial prior
         pl.BlockSpec((bb, Hgp), lambda g, t: (g, 0))]         # initial hidden
        # weights: same block for every grid step -> DMA'd once, VMEM-resident
        + [pl.BlockSpec(w.shape, lambda g, t: (0, 0)) for w in weights]
    )
    out_specs = (
        pl.BlockSpec((1, bb, S), lambda g, t: (t, g, 0)),      # per-step states
        pl.BlockSpec((bb, S), lambda g, t: (g, 0)),            # final prior
        pl.BlockSpec((bb, Hgp), lambda g, t: (g, 0)),          # final hidden
    )
    out_shape = (
        jax.ShapeDtypeStruct((T, B, S), jnp.float32),
        jax.ShapeDtypeStruct((B, S), jnp.float32),
        jax.ShapeDtypeStruct((B, Hgp), jnp.float32),
    )
    grid_spec = pltpu.PrefetchScalarGridSpec(
        num_scalar_prefetch=0,
        grid=(G, T),
        in_specs=in_specs,
        out_specs=out_specs,
        scratch_shapes=[pltpu.VMEM((bb, S), jnp.float32),
                        pltpu.VMEM((bb, S), jnp.float32),
                        pltpu.VMEM((bb, Hgp), jnp.float32)],
    )
    return pl.pallas_call(
        kalmannet_seq_kernel,
        out_shape=out_shape,
        grid_spec=grid_spec,
        compiler_params=pltpu.CompilerParams(
            dimension_semantics=("parallel", "arbitrary")),
    )(obs, post0, prior0, h0, *weights)


def _bf16_dot(a, w_bf16):
    return jnp.dot(a.astype(jnp.bfloat16), w_bf16,
                   preferred_element_type=jnp.float32)


def reference_sequence(obs, post0, prior0, h0, raw):
    """Pure-JAX mirror of the PyTorch per-step forward (vectorized over batch).

    Uses the raw (untransposed / unfused / unpadded) weights and the same
    bf16-operand / f32-accumulate matmul policy as the kernel.
    """
    Fb = raw["F"].astype(jnp.bfloat16)
    Hb = raw["H"].astype(jnp.bfloat16)
    W1b = raw["W1"].astype(jnp.bfloat16)
    Wihb = raw["Wih"].astype(jnp.bfloat16)
    Whhb = raw["Whh"].astype(jnp.bfloat16)
    W2b = raw["W2"].astype(jnp.bfloat16)
    W3b = raw["W3"].astype(jnp.bfloat16)
    b1, bih, bhh, b2, b3 = raw["b1"], raw["bih"], raw["bhh"], raw["b2"], raw["b3"]
    Hg = h0.shape[-1]
    S = post0.shape[-1]
    O = obs.shape[-1]
    post, prior, h = post0, prior0, h0
    states = []
    for t in range(obs.shape[0]):
        y = obs[t]
        prior_new = _bf16_dot(post, Fb.T)
        obs_prior = _bf16_dot(prior_new, Hb.T)
        innov = y - obs_prior
        innov_n = innov / jnp.maximum(
            jnp.linalg.norm(innov, axis=-1, keepdims=True), 1e-12)
        fwd = post - prior
        fwd_n = fwd / jnp.maximum(
            jnp.linalg.norm(fwd, axis=-1, keepdims=True), 1e-12)
        feat = jnp.concatenate([innov_n, fwd_n], axis=-1)
        l1 = jax.nn.relu(_bf16_dot(feat, W1b.T) + b1)
        gi = _bf16_dot(l1, Wihb.T) + bih
        gh = _bf16_dot(h, Whhb.T) + bhh
        r = jax.nn.sigmoid(gi[:, :Hg] + gh[:, :Hg])
        z = jax.nn.sigmoid(gi[:, Hg:2 * Hg] + gh[:, Hg:2 * Hg])
        n = jnp.tanh(gi[:, 2 * Hg:] + r * gh[:, 2 * Hg:])
        h = (1.0 - z) * n + z * h
        l2 = jax.nn.relu(_bf16_dot(h, W2b.T) + b2)
        gain = _bf16_dot(l2, W3b.T) + b3                    # (B, S*O)
        K = gain.reshape(-1, S, O)
        post = prior_new + jnp.sum(K * innov[:, None, :], axis=-1)
        prior = prior_new
        states.append(post)
    return jnp.stack(states, axis=0), prior, h


if __name__ == "__main__":
    # Shapes implied by the module: measurement_matrix is (obs_dim, state_dim).
    S, O = 4, 2                    # state_dim, observation_dim
    dt, taylor = 0.1, 1
    in_dim = S + O                 # 6
    H1 = in_dim * 10 * 8           # 480
    H2 = in_dim * 1 * 4            # 24
    Hg = (S * S + O * O) * 10      # 200
    out_dim = S * O                # 8
    H1p, Hgp, H2p = 512, 256, 128  # lane-aligned padded hidden dims

    T = 6                          # time steps
    B_blk = 8                      # sequences per grid point (sublane-aligned)
    G = 2                          # batch groups ("parallel" axis; 2 TCs on v7x)
    B = G * B_blk                  # 16 independent sequences

    key = jax.random.PRNGKey(0)
    keys = jax.random.split(key, 16)

    # Measurement matrix H (O, S) and continuous evolution matrix A (S, S).
    Hm = jax.random.normal(keys[0], (O, S), jnp.float32) * 0.5
    A = jax.random.normal(keys[1], (S, S), jnp.float32) * 0.3
    # Taylor matrix-exponential approximation: F = I + sum_i (A*dt)^i / i!
    F = jnp.eye(S, dtype=jnp.float32)
    Ai = jnp.eye(S, dtype=jnp.float32)
    for i in range(1, taylor + 1):
        Ai = Ai @ (A * dt)
        F = F + Ai / math.factorial(i)

    def lin_init(k, out_d, in_d):
        k1, k2 = jax.random.split(k)
        bound = 1.0 / math.sqrt(in_d)
        return (jax.random.uniform(k1, (out_d, in_d), jnp.float32, -bound, bound),
                jax.random.uniform(k2, (out_d,), jnp.float32, -bound, bound))

    W1, b1 = lin_init(keys[2], H1, in_dim)
    W2, b2 = lin_init(keys[3], H2, Hg)
    W3, b3 = lin_init(keys[4], out_dim, H2)
    gb = 1.0 / math.sqrt(Hg)
    Wih = jax.random.uniform(keys[5], (3 * Hg, H1), jnp.float32, -gb, gb)
    Whh = jax.random.uniform(keys[6], (3 * Hg, Hg), jnp.float32, -gb, gb)
    bih = jax.random.uniform(keys[7], (3 * Hg,), jnp.float32, -gb, gb)
    bhh = jax.random.uniform(keys[8], (3 * Hg,), jnp.float32, -gb, gb)

    # set_initial_conditions: posterior = prior = prev_prior = x0;
    # initialize_hidden_state: random GRU hidden.
    x0 = jax.random.normal(keys[9], (B, S), jnp.float32)
    h0 = jax.random.normal(keys[10], (B, Hg), jnp.float32)
    obs = jax.random.normal(keys[11], (T, B, O), jnp.float32)

    # ---- pack weights: transpose, fuse GRU gates, zero-pad to aligned dims ----
    W1_np, b1_np = np.asarray(W1), np.asarray(b1)
    Wih_np, Whh_np = np.asarray(Wih), np.asarray(Whh)
    bih_np, bhh_np = np.asarray(bih), np.asarray(bhh)
    W2_np, b2_np = np.asarray(W2), np.asarray(b2)
    W3_np, b3_np = np.asarray(W3), np.asarray(b3)
    F_np, Hm_np = np.asarray(F), np.asarray(Hm)

    w1a = np.zeros((O, H1p), np.float32); w1a[:, :H1] = W1_np[:, :O].T
    w1b = np.zeros((S, H1p), np.float32); w1b[:, :H1] = W1_np[:, O:].T
    b1_p = np.zeros((1, H1p), np.float32); b1_p[0, :H1] = b1_np

    wi_p = np.zeros((H1p, 3 * Hgp), np.float32)
    wh_p = np.zeros((Hgp, 3 * Hgp), np.float32)
    bi_p = np.zeros((1, 3 * Hgp), np.float32)
    bh_p = np.zeros((1, 3 * Hgp), np.float32)
    for gate in range(3):          # PyTorch GRU gate order: r, z, n
        wi_p[:H1, gate * Hgp:gate * Hgp + Hg] = Wih_np[gate * Hg:(gate + 1) * Hg, :].T
        wh_p[:Hg, gate * Hgp:gate * Hgp + Hg] = Whh_np[gate * Hg:(gate + 1) * Hg, :].T
        bi_p[0, gate * Hgp:gate * Hgp + Hg] = bih_np[gate * Hg:(gate + 1) * Hg]
        bh_p[0, gate * Hgp:gate * Hgp + Hg] = bhh_np[gate * Hg:(gate + 1) * Hg]

    w2_p = np.zeros((Hgp, H2p), np.float32); w2_p[:Hg, :H2] = W2_np.T
    b2_p = np.zeros((1, H2p), np.float32); b2_p[0, :H2] = b2_np
    w3_p = np.zeros((H2p, out_dim), np.float32); w3_p[:H2, :] = W3_np.T
    b3_p = b3_np[None, :].astype(np.float32)

    # One-hot pooling matrix: pool[s*O + o, s] = 1 (sums O-sized lane groups).
    idx = np.arange(S * O)
    pool_np = (idx[:, None] // O == np.arange(S)[None, :]).astype(np.float32)

    bf16 = lambda a: jnp.asarray(a, dtype=jnp.bfloat16)
    f32 = lambda a: jnp.asarray(a, dtype=jnp.float32)
    params = dict(
        Ft=bf16(F_np.T), Ht=bf16(Hm_np.T),
        w1a=bf16(w1a), w1b=bf16(w1b), b1=f32(b1_p),
        wi=bf16(wi_p), bi=f32(bi_p), wh=bf16(wh_p), bh=f32(bh_p),
        w2=bf16(w2_p), b2=f32(b2_p), w3=bf16(w3_p), b3=f32(b3_p),
        pool=bf16(pool_np),
    )

    h0_p = np.zeros((B, Hgp), np.float32); h0_p[:, :Hg] = np.asarray(h0)

    # ---- run the kernel: whole T-step recursion in a single pallas_call ----
    states_k, prior_k, h_k = jax.block_until_ready(
        kalmannet_estimate(obs, x0, x0, jnp.asarray(h0_p), params,
                           batch_block=B_blk))

    # ---- verify against a pure-JAX mirror of the PyTorch module ----
    raw = dict(F=F, H=Hm, W1=W1, b1=b1, Wih=Wih, Whh=Whh, bih=bih, bhh=bhh,
               W2=W2, b2=b2, W3=W3, b3=b3)
    states_r, prior_r, h_r = reference_sequence(obs, x0, x0, h0, raw)

    # Tolerance covers bf16-operand MXU rounding differences (and the bf16
    # segment-sum of the gain*innovation correction) accumulated over the
    # T-step recursion; any structural bug produces O(0.1 - 1) errors.
    tol = dict(rtol=3e-2, atol=3e-2)
    np.testing.assert_allclose(np.asarray(states_k), np.asarray(states_r), **tol)
    np.testing.assert_allclose(np.asarray(prior_k), np.asarray(prior_r), **tol)
    np.testing.assert_allclose(np.asarray(h_k)[:, :Hg], np.asarray(h_r), **tol)
    # Padded GRU lanes must stay exactly zero (padding is inert).
    np.testing.assert_allclose(np.asarray(h_k)[:, Hg:], 0.0, atol=1e-6)

    # TODO(synk): the nonlinear-evolution branch (_is_nonlinear_evolution=True,
    # per-state Taylor matrix exponential) is not implemented; the kernel covers
    # the module's default constant-F linear path.
    print("KERNEL_OK")
</pallas_src>

<mosaic_0001>
module attributes {stable_mosaic.version = 11 : i64} {
  func.func @kalmannet_seq_kernel(%arg0: i32, %arg1: i32, %arg2: memref<1x8x2xf32, #tpu.memory_space<vmem>>, %arg3: memref<8x4xf32, #tpu.memory_space<vmem>>, %arg4: memref<8x4xf32, #tpu.memory_space<vmem>>, %arg5: memref<8x256xf32, #tpu.memory_space<vmem>>, %arg6: memref<4x4xbf16, #tpu.memory_space<vmem>>, %arg7: memref<4x2xbf16, #tpu.memory_space<vmem>>, %arg8: memref<2x512xbf16, #tpu.memory_space<vmem>>, %arg9: memref<4x512xbf16, #tpu.memory_space<vmem>>, %arg10: memref<1x512xf32, #tpu.memory_space<vmem>>, %arg11: memref<512x768xbf16, #tpu.memory_space<vmem>>, %arg12: memref<1x768xf32, #tpu.memory_space<vmem>>, %arg13: memref<256x768xbf16, #tpu.memory_space<vmem>>, %arg14: memref<1x768xf32, #tpu.memory_space<vmem>>, %arg15: memref<256x128xbf16, #tpu.memory_space<vmem>>, %arg16: memref<1x128xf32, #tpu.memory_space<vmem>>, %arg17: memref<128x8xbf16, #tpu.memory_space<vmem>>, %arg18: memref<1x8xf32, #tpu.memory_space<vmem>>, %arg19: memref<8x4xbf16, #tpu.memory_space<vmem>>, %arg20: memref<1x8x4xf32, #tpu.memory_space<vmem>>, %arg21: memref<8x4xf32, #tpu.memory_space<vmem>>, %arg22: memref<8x256xf32, #tpu.memory_space<vmem>>, %arg23: memref<8x4xf32, #tpu.memory_space<vmem>>, %arg24: memref<8x4xf32, #tpu.memory_space<vmem>>, %arg25: memref<8x256xf32, #tpu.memory_space<vmem>>) attributes {dimension_semantics = [#tpu.dimension_semantics<parallel>, #tpu.dimension_semantics<arbitrary>], iteration_bounds = array<i64: 2, 6>, scalar_prefetch = 0 : i64, scratch_operands = 3 : i64, tpu.core_type = #tpu.core_type<tc>, window_params = [{transform_indices = @transform_0, window_bounds = array<i64: 1, 8, 2>}, {transform_indices = @transform_1, window_bounds = array<i64: 8, 4>}, {transform_indices = @transform_2, window_bounds = array<i64: 8, 4>}, {transform_indices = @transform_3, window_bounds = array<i64: 8, 256>}, {pipeline_mode = #tpu.pipeline_mode<synchronous>, transform_indices = @transform_4, window_bounds = array<i64: 4, 4>}, {pipeline_mode = #tpu.pipeline_mode<synchronous>, transform_indices = @transform_5, window_bounds = array<i64: 4, 2>}, {pipeline_mode = #tpu.pipeline_mode<synchronous>, transform_indices = @transform_6, window_bounds = array<i64: 2, 512>}, {pipeline_mode = #tpu.pipeline_mode<synchronous>, transform_indices = @transform_7, window_bounds = array<i64: 4, 512>}, {pipeline_mode = #tpu.pipeline_mode<synchronous>, transform_indices = @transform_8, window_bounds = array<i64: 1, 512>}, {pipeline_mode = #tpu.pipeline_mode<synchronous>, transform_indices = @transform_9, window_bounds = array<i64: 512, 768>}, {pipeline_mode = #tpu.pipeline_mode<synchronous>, transform_indices = @transform_10, window_bounds = array<i64: 1, 768>}, {pipeline_mode = #tpu.pipeline_mode<synchronous>, transform_indices = @transform_11, window_bounds = array<i64: 256, 768>}, {pipeline_mode = #tpu.pipeline_mode<synchronous>, transform_indices = @transform_12, window_bounds = array<i64: 1, 768>}, {pipeline_mode = #tpu.pipeline_mode<synchronous>, transform_indices = @transform_13, window_bounds = array<i64: 256, 128>}, {pipeline_mode = #tpu.pipeline_mode<synchronous>, transform_indices = @transform_14, window_bounds = array<i64: 1, 128>}, {pipeline_mode = #tpu.pipeline_mode<synchronous>, transform_indices = @transform_15, window_bounds = array<i64: 128, 8>}, {pipeline_mode = #tpu.pipeline_mode<synchronous>, transform_indices = @transform_16, window_bounds = array<i64: 1, 8>}, {pipeline_mode = #tpu.pipeline_mode<synchronous>, transform_indices = @transform_17, window_bounds = array<i64: 8, 4>}, {transform_indices = @transform_18, window_bounds = array<i64: 1, 8, 4>}, {transform_indices = @transform_19, window_bounds = array<i64: 8, 4>}, {transform_indices = @transform_20, window_bounds = array<i64: 8, 256>}]} {
    %c0_i32 = arith.constant 0 : i32
    %0 = arith.cmpi eq, %arg1, %c0_i32 : i32
    %1 = arith.extui %0 : i1 to i32
    %c0_i32_0 = arith.constant 0 : i32
    %2 = arith.cmpi ne, %1, %c0_i32_0 : i32
    scf.if %2 {
      %c0_67 = arith.constant 0 : index
      %c0_68 = arith.constant 0 : index
      %110 = vector.load %arg3[%c0_67, %c0_68] : memref<8x4xf32, #tpu.memory_space<vmem>>, vector<8x4xf32>
      %c0_69 = arith.constant 0 : index
      %c0_70 = arith.constant 0 : index
      %111 = vector.load %arg23[%c0_69, %c0_70] : memref<8x4xf32, #tpu.memory_space<vmem>>, vector<8x4xf32>
      tpu.vector_store %arg23[%c0_69, %c0_70], %110 {strides = array<i32>} : memref<8x4xf32, #tpu.memory_space<vmem>>, vector<8x4xf32>,
      %c0_71 = arith.constant 0 : index
      %c0_72 = arith.constant 0 : index
      %112 = vector.load %arg4[%c0_71, %c0_72] : memref<8x4xf32, #tpu.memory_space<vmem>>, vector<8x4xf32>
      %c0_73 = arith.constant 0 : index
      %c0_74 = arith.constant 0 : index
      %113 = vector.load %arg24[%c0_73, %c0_74] : memref<8x4xf32, #tpu.memory_space<vmem>>, vector<8x4xf32>
      tpu.vector_store %arg24[%c0_73, %c0_74], %112 {strides = array<i32>} : memref<8x4xf32, #tpu.memory_space<vmem>>, vector<8x4xf32>,
      %c0_75 = arith.constant 0 : index
      %c0_76 = arith.constant 0 : index
      %114 = vector.load %arg5[%c0_75, %c0_76] : memref<8x256xf32, #tpu.memory_space<vmem>>, vector<8x256xf32>
      %c0_77 = arith.constant 0 : index
      %c0_78 = arith.constant 0 : index
      %115 = vector.load %arg25[%c0_77, %c0_78] : memref<8x256xf32, #tpu.memory_space<vmem>>, vector<8x256xf32>
      tpu.vector_store %arg25[%c0_77, %c0_78], %114 {strides = array<i32>} : memref<8x256xf32, #tpu.memory_space<vmem>>, vector<8x256xf32>,
    } else {
    }
    %c0 = arith.constant 0 : index
    %c0_1 = arith.constant 0 : index
    %c0_2 = arith.constant 0 : index
    %3 = vector.load %arg2[%c0, %c0_1, %c0_2] : memref<1x8x2xf32, #tpu.memory_space<vmem>>, vector<1x8x2xf32>
    %4 = vector.shape_cast %3 : vector<1x8x2xf32> to vector<8x2xf32>
    %c0_3 = arith.constant 0 : index
    %c0_4 = arith.constant 0 : index
    %5 = vector.load %arg23[%c0_3, %c0_4] : memref<8x4xf32, #tpu.memory_space<vmem>>, vector<8x4xf32>
    %c0_5 = arith.constant 0 : index
    %c0_6 = arith.constant 0 : index
    %6 = vector.load %arg24[%c0_5, %c0_6] : memref<8x4xf32, #tpu.memory_space<vmem>>, vector<8x4xf32>
    %c0_7 = arith.constant 0 : index
    %c0_8 = arith.constant 0 : index
    %7 = vector.load %arg25[%c0_7, %c0_8] : memref<8x256xf32, #tpu.memory_space<vmem>>, vector<8x256xf32>
    %c0_9 = arith.constant 0 : index
    %c0_10 = arith.constant 0 : index
    %8 = vector.load %arg6[%c0_9, %c0_10] : memref<4x4xbf16, #tpu.memory_space<vmem>>, vector<4x4xbf16>
    %9 = arith.truncf %5 : vector<8x4xf32> to vector<8x4xbf16>
    %cst = arith.constant dense<0.000000e+00> : vector<8x4xf32>
    %10 = tpu.matmul %9, %8, %cst {dimension_numbers = #tpu.dot_dimension_numbers<[1], [0], [0], [1], [0, 0, 1, 1], [], []>} : vector<8x4xbf16>, vector<4x4xbf16>, vector<8x4xf32> -> vector<8x4xf32>
    %c0_11 = arith.constant 0 : index
    %c0_12 = arith.constant 0 : index
    %11 = vector.load %arg7[%c0_11, %c0_12] : memref<4x2xbf16, #tpu.memory_space<vmem>>, vector<4x2xbf16>
    %12 = arith.truncf %10 : vector<8x4xf32> to vector<8x4xbf16>
    %cst_13 = arith.constant dense<0.000000e+00> : vector<8x2xf32>
    %13 = tpu.matmul %12, %11, %cst_13 {dimension_numbers = #tpu.dot_dimension_numbers<[1], [0], [0], [1], [0, 0, 1, 1], [], []>} : vector<8x4xbf16>, vector<4x2xbf16>, vector<8x2xf32> -> vector<8x2xf32>
    %14 = arith.subf %4, %13 : vector<8x2xf32>
    %15 = arith.mulf %14, %14 : vector<8x2xf32>
    %cst_14 = arith.constant dense<0.000000e+00> : vector<8xf32>
    %16 = vector.multi_reduction <add>, %15, %cst_14 [1] : vector<8x2xf32> to vector<8xf32>
    %17 = vector.shape_cast %16 : vector<8xf32> to vector<8x1xf32>
    %18 = math.sqrt %17 : vector<8x1xf32>
    %cst_15 = arith.constant 9.99999996E-13 : f32
    %19 = vector.broadcast %cst_15 : f32 to vector<8x1xf32>
    %20 = arith.maximumf %18, %19 : vector<8x1xf32>
    %21 = vector.broadcast %20 : vector<8x1xf32> to vector<8x2xf32>
    %22 = arith.divf %14, %21 : vector<8x2xf32>
    %23 = arith.subf %5, %6 : vector<8x4xf32>
    %24 = arith.mulf %23, %23 : vector<8x4xf32>
    %cst_16 = arith.constant dense<0.000000e+00> : vector<8xf32>
    %25 = vector.multi_reduction <add>, %24, %cst_16 [1] : vector<8x4xf32> to vector<8xf32>
    %26 = vector.shape_cast %25 : vector<8xf32> to vector<8x1xf32>
    %27 = math.sqrt %26 : vector<8x1xf32>
    %cst_17 = arith.constant 9.99999996E-13 : f32
    %28 = vector.broadcast %cst_17 : f32 to vector<8x1xf32>
    %29 = arith.maximumf %27, %28 : vector<8x1xf32>
    %30 = vector.broadcast %29 : vector<8x1xf32> to vector<8x4xf32>
    %31 = arith.divf %23, %30 : vector<8x4xf32>
    %c0_18 = arith.constant 0 : index
    %c0_19 = arith.constant 0 : index
    %32 = vector.load %arg8[%c0_18, %c0_19] : memref<2x512xbf16, #tpu.memory_space<vmem>>, vector<2x512xbf16>
    %33 = arith.truncf %22 : vector<8x2xf32> to vector<8x2xbf16>
    %cst_20 = arith.constant dense<0.000000e+00> : vector<8x512xf32>
    %34 = tpu.matmul %33, %32, %cst_20 {dimension_numbers = #tpu.dot_dimension_numbers<[1], [0], [0], [1], [0, 0, 1, 1], [], []>} : vector<8x2xbf16>, vector<2x512xbf16>, vector<8x512xf32> -> vector<8x512xf32>
    %c0_21 = arith.constant 0 : index
    %c0_22 = arith.constant 0 : index
    %35 = vector.load %arg9[%c0_21, %c0_22] : memref<4x512xbf16, #tpu.memory_space<vmem>>, vector<4x512xbf16>
    %36 = arith.truncf %31 : vector<8x4xf32> to vector<8x4xbf16>
    %cst_23 = arith.constant dense<0.000000e+00> : vector<8x512xf32>
    %37 = tpu.matmul %36, %35, %cst_23 {dimension_numbers = #tpu.dot_dimension_numbers<[1], [0], [0], [1], [0, 0, 1, 1], [], []>} : vector<8x4xbf16>, vector<4x512xbf16>, vector<8x512xf32> -> vector<8x512xf32>
    %38 = arith.addf %34, %37 : vector<8x512xf32>
    %c0_24 = arith.constant 0 : index
    %c0_25 = arith.constant 0 : index
    %39 = vector.load %arg10[%c0_24, %c0_25] : memref<1x512xf32, #tpu.memory_space<vmem>>, vector<1x512xf32>
    %40 = vector.broadcast %39 : vector<1x512xf32> to vector<8x512xf32>
    %41 = arith.addf %38, %40 : vector<8x512xf32>
    %cst_26 = arith.constant 0.000000e+00 : f32
    %42 = vector.broadcast %cst_26 : f32 to vector<8x512xf32>
    %43 = arith.maximumf %41, %42 : vector<8x512xf32>
    %c0_27 = arith.constant 0 : index
    %c0_28 = arith.constant 0 : index
    %44 = vector.load %arg11[%c0_27, %c0_28] : memref<512x768xbf16, #tpu.memory_space<vmem>>, vector<512x768xbf16>
    %45 = arith.truncf %43 : vector<8x512xf32> to vector<8x512xbf16>
    %cst_29 = arith.constant dense<0.000000e+00> : vector<8x768xf32>
    %46 = tpu.matmul %45, %44, %cst_29 {dimension_numbers = #tpu.dot_dimension_numbers<[1], [0], [0], [1], [0, 0, 1, 1], [], []>} : vector<8x512xbf16>, vector<512x768xbf16>, vector<8x768xf32> -> vector<8x768xf32>
    %c0_30 = arith.constant 0 : index
    %c0_31 = arith.constant 0 : index
    %47 = vector.load %arg12[%c0_30, %c0_31] : memref<1x768xf32, #tpu.memory_space<vmem>>, vector<1x768xf32>
    %48 = vector.broadcast %47 : vector<1x768xf32> to vector<8x768xf32>
    %49 = arith.addf %46, %48 : vector<8x768xf32>
    %c0_32 = arith.constant 0 : index
    %c0_33 = arith.constant 0 : index
    %50 = vector.load %arg13[%c0_32, %c0_33] : memref<256x768xbf16, #tpu.memory_space<vmem>>, vector<256x768xbf16>
    %51 = arith.truncf %7 : vector<8x256xf32> to vector<8x256xbf16>
    %cst_34 = arith.constant dense<0.000000e+00> : vector<8x768xf32>
    %52 = tpu.matmul %51, %50, %cst_34 {dimension_numbers = #tpu.dot_dimension_numbers<[1], [0], [0], [1], [0, 0, 1, 1], [], []>} : vector<8x256xbf16>, vector<256x768xbf16>, vector<8x768xf32> -> vector<8x768xf32>
    %c0_35 = arith.constant 0 : index
    %c0_36 = arith.constant 0 : index
    %53 = vector.load %arg14[%c0_35, %c0_36] : memref<1x768xf32, #tpu.memory_space<vmem>>, vector<1x768xf32>
    %54 = vector.broadcast %53 : vector<1x768xf32> to vector<8x768xf32>
    %55 = arith.addf %52, %54 : vector<8x768xf32>
    %56 = vector.extract_strided_slice %49 {offsets = [0, 0], sizes = [8, 256], strides = [1, 1]} : vector<8x768xf32> to vector<8x256xf32>
    %57 = vector.extract_strided_slice %55 {offsets = [0, 0], sizes = [8, 256], strides = [1, 1]} : vector<8x768xf32> to vector<8x256xf32>
    %58 = arith.addf %56, %57 : vector<8x256xf32>
    %59 = arith.negf %58 : vector<8x256xf32>
    %60 = math.exp %59 : vector<8x256xf32>
    %cst_37 = arith.constant 1.000000e+00 : f32
    %61 = vector.broadcast %cst_37 : f32 to vector<8x256xf32>
    %62 = arith.addf %61, %60 : vector<8x256xf32>
    %63 = arith.divf %61, %62 : vector<8x256xf32>
    %64 = vector.extract_strided_slice %49 {offsets = [0, 256], sizes = [8, 256], strides = [1, 1]} : vector<8x768xf32> to vector<8x256xf32>
    %65 = vector.extract_strided_slice %55 {offsets = [0, 256], sizes = [8, 256], strides = [1, 1]} : vector<8x768xf32> to vector<8x256xf32>
    %66 = arith.addf %64, %65 : vector<8x256xf32>
    %67 = arith.negf %66 : vector<8x256xf32>
    %68 = math.exp %67 : vector<8x256xf32>
    %cst_38 = arith.constant 1.000000e+00 : f32
    %69 = vector.broadcast %cst_38 : f32 to vector<8x256xf32>
    %70 = arith.addf %69, %68 : vector<8x256xf32>
    %71 = arith.divf %69, %70 : vector<8x256xf32>
    %72 = vector.extract_strided_slice %49 {offsets = [0, 512], sizes = [8, 256], strides = [1, 1]} : vector<8x768xf32> to vector<8x256xf32>
    %73 = vector.extract_strided_slice %55 {offsets = [0, 512], sizes = [8, 256], strides = [1, 1]} : vector<8x768xf32> to vector<8x256xf32>
    %74 = arith.mulf %63, %73 : vector<8x256xf32>
    %75 = arith.addf %72, %74 : vector<8x256xf32>
    %76 = math.tanh %75 : vector<8x256xf32>
    %cst_39 = arith.constant 1.000000e+00 : f32
    %77 = vector.broadcast %cst_39 : f32 to vector<8x256xf32>
    %78 = arith.subf %77, %71 : vector<8x256xf32>
    %79 = arith.mulf %78, %76 : vector<8x256xf32>
    %80 = arith.mulf %71, %7 : vector<8x256xf32>
    %81 = arith.addf %79, %80 : vector<8x256xf32>
    %c0_40 = arith.constant 0 : index
    %c0_41 = arith.constant 0 : index
    %82 = vector.load %arg15[%c0_40, %c0_41] : memref<256x128xbf16, #tpu.memory_space<vmem>>, vector<256x128xbf16>
    %83 = arith.truncf %81 : vector<8x256xf32> to vector<8x256xbf16>
    %cst_42 = arith.constant dense<0.000000e+00> : vector<8x128xf32>
    %84 = tpu.matmul %83, %82, %cst_42 {dimension_numbers = #tpu.dot_dimension_numbers<[1], [0], [0], [1], [0, 0, 1, 1], [], []>} : vector<8x256xbf16>, vector<256x128xbf16>, vector<8x128xf32> -> vector<8x128xf32>
    %c0_43 = arith.constant 0 : index
    %c0_44 = arith.constant 0 : index
    %85 = vector.load %arg16[%c0_43, %c0_44] : memref<1x128xf32, #tpu.memory_space<vmem>>, vector<1x128xf32>
    %86 = vector.broadcast %85 : vector<1x128xf32> to vector<8x128xf32>
    %87 = arith.addf %84, %86 : vector<8x128xf32>
    %cst_45 = arith.constant 0.000000e+00 : f32
    %88 = vector.broadcast %cst_45 : f32 to vector<8x128xf32>
    %89 = arith.maximumf %87, %88 : vector<8x128xf32>
    %c0_46 = arith.constant 0 : index
    %c0_47 = arith.constant 0 : index
    %90 = vector.load %arg17[%c0_46, %c0_47] : memref<128x8xbf16, #tpu.memory_space<vmem>>, vector<128x8xbf16>
    %91 = arith.truncf %89 : vector<8x128xf32> to vector<8x128xbf16>
    %cst_48 = arith.constant dense<0.000000e+00> : vector<8x8xf32>
    %92 = tpu.matmul %91, %90, %cst_48 {dimension_numbers = #tpu.dot_dimension_numbers<[1], [0], [0], [1], [0, 0, 1, 1], [], []>} : vector<8x128xbf16>, vector<128x8xbf16>, vector<8x8xf32> -> vector<8x8xf32>
    %c0_49 = arith.constant 0 : index
    %c0_50 = arith.constant 0 : index
    %93 = vector.load %arg18[%c0_49, %c0_50] : memref<1x8xf32, #tpu.memory_space<vmem>>, vector<1x8xf32>
    %94 = vector.broadcast %93 : vector<1x8xf32> to vector<8x8xf32>
    %95 = arith.addf %92, %94 : vector<8x8xf32>
    %96 = tpu.concatenate %14, %14, %14, %14 in 1 : vector<8x2xf32>, vector<8x2xf32>, vector<8x2xf32>, vector<8x2xf32> -> vector<8x8xf32>
    %97 = arith.mulf %95, %96 : vector<8x8xf32>
    %c0_51 = arith.constant 0 : index
    %c0_52 = arith.constant 0 : index
    %98 = vector.load %arg19[%c0_51, %c0_52] : memref<8x4xbf16, #tpu.memory_space<vmem>>, vector<8x4xbf16>
    %99 = arith.truncf %97 : vector<8x8xf32> to vector<8x8xbf16>
    %cst_53 = arith.constant dense<0.000000e+00> : vector<8x4xf32>
    %100 = tpu.matmul %99, %98, %cst_53 {dimension_numbers = #tpu.dot_dimension_numbers<[1], [0], [0], [1], [0, 0, 1, 1], [], []>} : vector<8x8xbf16>, vector<8x4xbf16>, vector<8x4xf32> -> vector<8x4xf32>
    %101 = arith.addf %10, %100 : vector<8x4xf32>
    %c0_54 = arith.constant 0 : index
    %c0_55 = arith.constant 0 : index
    %102 = vector.load %arg23[%c0_54, %c0_55] : memref<8x4xf32, #tpu.memory_space<vmem>>, vector<8x4xf32>
    tpu.vector_store %arg23[%c0_54, %c0_55], %101 {strides = array<i32>} : memref<8x4xf32, #tpu.memory_space<vmem>>, vector<8x4xf32>,
    %c0_56 = arith.constant 0 : index
    %c0_57 = arith.constant 0 : index
    %103 = vector.load %arg24[%c0_56, %c0_57] : memref<8x4xf32, #tpu.memory_space<vmem>>, vector<8x4xf32>
    tpu.vector_store %arg24[%c0_56, %c0_57], %10 {strides = array<i32>} : memref<8x4xf32, #tpu.memory_space<vmem>>, vector<8x4xf32>,
    %c0_58 = arith.constant 0 : index
    %c0_59 = arith.constant 0 : index
    %104 = vector.load %arg25[%c0_58, %c0_59] : memref<8x256xf32, #tpu.memory_space<vmem>>, vector<8x256xf32>
    tpu.vector_store %arg25[%c0_58, %c0_59], %81 {strides = array<i32>} : memref<8x256xf32, #tpu.memory_space<vmem>>, vector<8x256xf32>,
    %c0_60 = arith.constant 0 : index
    %c0_61 = arith.constant 0 : index
    %c0_62 = arith.constant 0 : index
    %105 = vector.load %arg20[%c0_60, %c0_61, %c0_62] : memref<1x8x4xf32, #tpu.memory_space<vmem>>, vector<1x8x4xf32>
    %106 = vector.shape_cast %105 : vector<1x8x4xf32> to vector<8x4xf32>
    %107 = vector.shape_cast %101 : vector<8x4xf32> to vector<1x8x4xf32>
    tpu.vector_store %arg20[%c0_60, %c0_61, %c0_62], %107 {strides = array<i32>} : memref<1x8x4xf32, #tpu.memory_space<vmem>>, vector<1x8x4xf32>,
    %c0_63 = arith.constant 0 : index
    %c0_64 = arith.constant 0 : index
    %108 = vector.load %arg21[%c0_63, %c0_64] : memref<8x4xf32, #tpu.memory_space<vmem>>, vector<8x4xf32>
    tpu.vector_store %arg21[%c0_63, %c0_64], %10 {strides = array<i32>} : memref<8x4xf32, #tpu.memory_space<vmem>>, vector<8x4xf32>,
    %c0_65 = arith.constant 0 : index
    %c0_66 = arith.constant 0 : index
    %109 = vector.load %arg22[%c0_65, %c0_66] : memref<8x256xf32, #tpu.memory_space<vmem>>, vector<8x256xf32>
    tpu.vector_store %arg22[%c0_65, %c0_66], %81 {strides = array<i32>} : memref<8x256xf32, #tpu.memory_space<vmem>>, vector<8x256xf32>,
    return
  }
  func.func @transform_0(%arg0: i32, %arg1: i32) -> (i32, i32, i32) {
    %c0_i32 = arith.constant 0 : i32
    %c0_i32_0 = arith.constant 0 : i32
    return %arg1, %arg0, %c0_i32 : i32, i32, i32
  }
  func.func @transform_1(%arg0: i32, %arg1: i32) -> (i32, i32) {
    %c0_i32 = arith.constant 0 : i32
    %c0_i32_0 = arith.constant 0 : i32
    return %arg0, %c0_i32 : i32, i32
  }
  func.func @transform_2(%arg0: i32, %arg1: i32) -> (i32, i32) {
    %c0_i32 = arith.constant 0 : i32
    %c0_i32_0 = arith.constant 0 : i32
    return %arg0, %c0_i32 : i32, i32
  }
  func.func @transform_3(%arg0: i32, %arg1: i32) -> (i32, i32) {
    %c0_i32 = arith.constant 0 : i32
    %c0_i32_0 = arith.constant 0 : i32
    return %arg0, %c0_i32 : i32, i32
  }
  func.func @transform_4(%arg0: i32, %arg1: i32) -> (i32, i32) {
    %c0_i32 = arith.constant 0 : i32
    %c0_i32_0 = arith.constant 0 : i32
    %c0_i32_1 = arith.constant 0 : i32
    return %c0_i32, %c0_i32_0 : i32, i32
  }
  func.func @transform_5(%arg0: i32, %arg1: i32) -> (i32, i32) {
    %c0_i32 = arith.constant 0 : i32
    %c0_i32_0 = arith.constant 0 : i32
    %c0_i32_1 = arith.constant 0 : i32
    return %c0_i32, %c0_i32_0 : i32, i32
  }
  func.func @transform_6(%arg0: i32, %arg1: i32) -> (i32, i32) {
    %c0_i32 = arith.constant 0 : i32
    %c0_i32_0 = arith.constant 0 : i32
    %c0_i32_1 = arith.constant 0 : i32
    return %c0_i32, %c0_i32_0 : i32, i32
  }
  func.func @transform_7(%arg0: i32, %arg1: i32) -> (i32, i32) {
    %c0_i32 = arith.constant 0 : i32
    %c0_i32_0 = arith.constant 0 : i32
    %c0_i32_1 = arith.constant 0 : i32
    return %c0_i32, %c0_i32_0 : i32, i32
  }
  func.func @transform_8(%arg0: i32, %arg1: i32) -> (i32, i32) {
    %c0_i32 = arith.constant 0 : i32
    %c0_i32_0 = arith.constant 0 : i32
    %c0_i32_1 = arith.constant 0 : i32
    return %c0_i32, %c0_i32_0 : i32, i32
  }
  func.func @transform_9(%arg0: i32, %arg1: i32) -> (i32, i32) {
    %c0_i32 = arith.constant 0 : i32
    %c0_i32_0 = arith.constant 0 : i32
    %c0_i32_1 = arith.constant 0 : i32
    return %c0_i32, %c0_i32_0 : i32, i32
  }
  func.func @transform_10(%arg0: i32, %arg1: i32) -> (i32, i32) {
    %c0_i32 = arith.constant 0 : i32
    %c0_i32_0 = arith.constant 0 : i32
    %c0_i32_1 = arith.constant 0 : i32
    return %c0_i32, %c0_i32_0 : i32, i32
  }
  func.func @transform_11(%arg0: i32, %arg1: i32) -> (i32, i32) {
    %c0_i32 = arith.constant 0 : i32
    %c0_i32_0 = arith.constant 0 : i32
    %c0_i32_1 = arith.constant 0 : i32
    return %c0_i32, %c0_i32_0 : i32, i32
  }
  func.func @transform_12(%arg0: i32, %arg1: i32) -> (i32, i32) {
    %c0_i32 = arith.constant 0 : i32
    %c0_i32_0 = arith.constant 0 : i32
    %c0_i32_1 = arith.constant 0 : i32
    return %c0_i32, %c0_i32_0 : i32, i32
  }
  func.func @transform_13(%arg0: i32, %arg1: i32) -> (i32, i32) {
    %c0_i32 = arith.constant 0 : i32
    %c0_i32_0 = arith.constant 0 : i32
    %c0_i32_1 = arith.constant 0 : i32
    return %c0_i32, %c0_i32_0 : i32, i32
  }
  func.func @transform_14(%arg0: i32, %arg1: i32) -> (i32, i32) {
    %c0_i32 = arith.constant 0 : i32
    %c0_i32_0 = arith.constant 0 : i32
    %c0_i32_1 = arith.constant 0 : i32
    return %c0_i32, %c0_i32_0 : i32, i32
  }
  func.func @transform_15(%arg0: i32, %arg1: i32) -> (i32, i32) {
    %c0_i32 = arith.constant 0 : i32
    %c0_i32_0 = arith.constant 0 : i32
    %c0_i32_1 = arith.constant 0 : i32
    return %c0_i32, %c0_i32_0 : i32, i32
  }
  func.func @transform_16(%arg0: i32, %arg1: i32) -> (i32, i32) {
    %c0_i32 = arith.constant 0 : i32
    %c0_i32_0 = arith.constant 0 : i32
    %c0_i32_1 = arith.constant 0 : i32
    return %c0_i32, %c0_i32_0 : i32, i32
  }
  func.func @transform_17(%arg0: i32, %arg1: i32) -> (i32, i32) {
    %c0_i32 = arith.constant 0 : i32
    %c0_i32_0 = arith.constant 0 : i32
    %c0_i32_1 = arith.constant 0 : i32
    return %c0_i32, %c0_i32_0 : i32, i32
  }
  func.func @transform_18(%arg0: i32, %arg1: i32) -> (i32, i32, i32) {
    %c0_i32 = arith.constant 0 : i32
    %c0_i32_0 = arith.constant 0 : i32
    return %arg1, %arg0, %c0_i32 : i32, i32, i32
  }
  func.func @transform_19(%arg0: i32, %arg1: i32) -> (i32, i32) {
    %c0_i32 = arith.constant 0 : i32
    %c0_i32_0 = arith.constant 0 : i32
    return %arg0, %c0_i32 : i32, i32
  }
  func.func @transform_20(%arg0: i32, %arg1: i32) -> (i32, i32) {
    %c0_i32 = arith.constant 0 : i32
    %c0_i32_0 = arith.constant 0 : i32
    return %arg0, %c0_i32 : i32, i32
  }
}

</mosaic_0001>

<bundles_post_ra>
// kernel: tpu_custom_call.1
= control target key start
LH: loop header
LB: loop body
LE: loop exit
PB: predicated region body
PF: predicated region fallthrough
CT: control target
= control target key end

     0   :  { %s5796_s0 = inlined_call_operand.vmem [shape: f32[6,16,2], index: 0, kind: input, shape index: {}]   ;;  %s5797_s1 = inlined_call_operand.vmem [shape: f32[16,4], index: 1, kind: input, shape index: {}]   ;;  %s5798_s2 = inlined_call_operand.vmem [shape: f32[16,4], index: 2, kind: input, shape index: {}]   ;;  %s5799_s3 = inlined_call_operand.vmem [shape: f32[16,256], index: 3, kind: input, shape index: {}]   ;;  %s5800_s4 = inlined_call_operand.vmem [shape: bf16[4,4], index: 4, kind: input, shape index: {}]   ;;  %s5801_s5 = inlined_call_operand.vmem [shape: bf16[4,2], index: 5, kind: input, shape index: {}]   ;;  %s5802_s6 = inlined_call_operand.vmem [shape: bf16[2,512], index: 6, kind: input, shape index: {}]   ;;  %s5803_s7 = inlined_call_operand.vmem [shape: bf16[4,512], index: 7, kind: input, shape index: {}]   ;;  %s5804_s8 = inlined_call_operand.vmem [shape: f32[1,512], index: 8, kind: input, shape index: {}]   ;;  %s5805_s9 = inlined_call_operand.hbm [shape: bf16[512,768], index: 9, kind: input, shape index: {}]   ;;  %s5806_s10 = inlined_call_operand.vmem [shape: f32[1,768], index: 10, kind: input, shape index: {}]   ;;  %s5807_s11 = inlined_call_operand.hbm [shape: bf16[256,768], index: 11, kind: input, shape index: {}]   ;;  %s5808_s12 = inlined_call_operand.vmem [shape: f32[1,768], index: 12, kind: input, shape index: {}]   ;;  %s5809_s13 = inlined_call_operand.vmem [shape: bf16[256,128], index: 13, kind: input, shape index: {}]   ;;  %s5810_s14 = inlined_call_operand.vmem [shape: f32[1,128], index: 14, kind: input, shape index: {}]   ;;  %s5811_s15 = inlined_call_operand.vmem [shape: bf16[128,8], index: 15, kind: input, shape index: {}]   ;;  %s5812_s16 = inlined_call_operand.vmem [shape: f32[1,8], index: 16, kind: input, shape index: {}]   ;;  %s5813_s17 = inlined_call_operand.vmem [shape: bf16[8,4], index: 17, kind: input, shape index: {}]   ;;  %s5814_s18 = inlined_call_operand.vmem [shape: f32[6,16,4], index: 18, kind: output, shape index: {0}]   ;;  %s5815_s19 = inlined_call_operand.vmem [shape: f32[16,4], index: 19, kind: output, shape index: {1}]   ;;  %s5816_s20 = inlined_call_operand.hbm [shape: f32[16,256], index: 20, kind: output, shape index: {2}]  }
   0x1   :  { %5836 = sst [smem:[#allocation26_spill]] %s5796_s0 }
   0x2   :  { %5837 = sst [smem:[#allocation27_spill]] %s5797_s1 }
   0x3   :  { %5838 = sst [smem:[#allocation28_spill]] %s5798_s2 }
   0x4   :  { %5839 = sst [smem:[#allocation29_spill]] %s5799_s3 }
   0x5   :  { %5840 = sst [smem:[#allocation30_spill]] %s5800_s4 }
   0x6   :  { %5841 = sst [smem:[#allocation31_spill]] %s5805_s9 }
   0x7   :  { %5842 = sst [smem:[#allocation32_spill]] %s5806_s10 }
   0x8   :  { %5843 = sst [smem:[#allocation33_spill]] %s5807_s11 }
   0x9   :  { %5844 = sst [smem:[#allocation34_spill]] %s5808_s12 }
   0xa   :  { %5845 = sst [smem:[#allocation35_spill]] %s5810_s14 }
   0xb   :  { %5846 = sst [smem:[#allocation36_spill]] %s5811_s15 }
   0xc   :  { %5847 = sst [smem:[#allocation37_spill]] %s5812_s16 }
   0xd   :  { %5848 = sst [smem:[#allocation38_spill]] %s5813_s17 }
   0xe   :  { %5849 = sst [smem:[#allocation39_spill]] %s5816_s20 }
   0xf   :  { %26 = vsyncpa [#allocation6], 0 }
  0x10   :  { %27 = vsyncpa [#allocation9], 0 }
  0x11   :  { %28 = vsyncpa [#allocation7], 0 }
  0x12   :  { %30 = vsyncpa [#allocation7 + $0x1], 0  ;;  %s5307_s1 = smov 0   ;;  %s5309_s22 = smov 0  }
  0x13   :  { %s5311_s23 = smov 0   ;;  %s5313_s24 = smov 0  }
  0x14   :  { %s5315_s2 = smov 0   ;;  %s5317_s25 = smov 0  }
  0x15   :  { %s5319_s3 = smov 0   ;;  %s5321_s26 = smov 0  }
  0x16 LB: > { %5850 = sst [smem:[#allocation14_spill]] %s5159_s1  ;;  %s3986_s27 = sadd.s32 4294967295, %s5187_s26   ;;  %s5187_s26 = sphi %s5321_s26, %s36_s26   ;;  %s5183_s3 = sphi %s5319_s3, %s5898_s3   ;;  %s5179_s25 = sphi %s5317_s25, %s5897_s25   ;;  %s5175_s2 = sphi %s5315_s2, %s5896_s2   ;;  %s5171_s24 = sphi %s5313_s24, %s5895_s24   ;;  %s5167_s23 = sphi %s5311_s23, %s5894_s23   ;;  %s5163_s22 = sphi %s5309_s22, %s5893_s22   ;;  %s5159_s1 = sphi %s5307_s1, %s5892_s1  }
  0x17   : > { %5851 = sst [smem:[#allocation15_spill]] %s5163_s22  ;;  %s3987_s28 = sadd.s32 4294967294, %s5187_s26  }
  0x18   : > { %5852 = sst [smem:[#allocation16_spill]] %s5167_s23  ;;  %s45_s4 = sadd.s32 1, %s5179_s25 }
  0x19   : > { %5853 = sst [smem:[#allocation17_spill]] %s5175_s2  ;;  %s48_s29 = sadd.s32 1, %s5183_s3 }
  0x1a   : > { %5854 = sst [smem:[#allocation18_spill]] %s5179_s25  ;;  %p46_p0 = scmp.ge.s32.totalorder %s45_s4, 6 }
  0x1b   : > { %5855 = sst [smem:[#allocation19_spill]] %s5183_s3  ;;  %s509_s30 = sadd.s32 1, %s5167_s23 }
  0x1c   : > { %5856 = sst [smem:[#allocation20_spill]] %s5187_s26  ;;  %p519_p1 = scmp.ne.s32.totalorder %s5167_s23, %s5163_s22 }
  0x1d   : > { %p520_p2 = scmp.eq.s32.totalorder %s3986_s27, 11  ;;  %s5900_s4 = smov (%p46_p0, %s45_s4), 0 }
  0x1e   : > { %5857 = sst [smem:[#allocation21_spill]] %s5900_s4  ;;  %s5902_s29 = smov (!%p46_p0, %s48_s29), %s5183_s3 }
  0x1f   : > { %p5357_p3 = por %p520_p2, %p519_p1  ;;  %p525_p4 = scmp.ne.s32.totalorder %s5163_s22, %s5159_s1 }
  0x20   : > { %p50_p5 = scmp.ge.s32.totalorder %s5902_s29, 2  ;;  %p526_p6 = scmp.eq.s32.totalorder %s3987_s28, 11 }
  0x21   : > { %s5858_s0 = scalar_select %p5357_p3, 1, 0 }
  0x22   : > { %p3988_p7 = scmp.ge.s32.totalorder %s5187_s26, 1  ;;  %p533_p8 = scmp.lt.s32.totalorder %s5187_s26, 13 }
  0x23   : > { %5859 = sst [smem:[#allocation22_spill]] %s5858_s0  ;;  %s5904_s29 = smov (%p50_p5, %s5902_s29), 0 }
  0x24   : > { %5860 = sst [smem:[#allocation23_spill]] %s5904_s29  ;;  %p5367_p9 = por %p526_p6, %p525_p4 }
  0x25   : > { %p5371_p10 = pnand %p3988_p7, %p533_p8  ;;  %s506_s4 = ssub.s32 %s5183_s3, %s5904_s29 }
  0x26   : > { %s5861_s21 = scalar_select %p5367_p9, 1, 0 }
  0x27   : > { %s5863_s25 = scalar_select %p5371_p10, 1, 0 }
  0x28   : > { %5862 = sst [smem:[#allocation24_spill]] %s5861_s21  ;;  %p507_p11 = scmp.eq.s32.totalorder %s506_s4, 0 }
  0x29   : > { %p4452_p12 = pneg %p5371_p10  ;;  %p5379_p13 = scmp.eq.s32.totalorder %s3986_s27, 0 }
  0x2a   : > { %s5384_s1 = scalar_select %p507_p11, %s5167_s23, %s509_s30  }
  0x2b   : > { %s5864_s28 = scalar_select %p5379_p13, 1, 0 }
  0x2c   : > { %5865 = sst [smem:[#allocation25_spill]] %s5384_s1  ;;  %s5189_s26 = smov [#allocation5]  }
  0x2d   : > { %s560_s20 = sshll.u32 %s5189_s26, 4  ;;  %p5388_p0 = pnand %p5379_p13, %p4452_p12  ;;  %s561_s20 = int_to_ptr.vmem [resolvable:$true] %s560_s20 }
  0x2e   : > { %s5867_s9 = sld [smem:[#allocation31_spill]] }
  0x2f   : > { %p5031_p2 = pneg %p5388_p0 }
  0x34   : > { %s5029_s27 = scalar_lea.hbm %s5867_s9, 24576 }
  0x35   : > { %p5030_p1 = scmp.ne.s32.totalorder %s5867_s9, %s5029_s27  ;;  %p5036_p6 = scmp.lt.u32.totalorder %s5029_s27, %s5867_s9 }
  0x37   : > { %p5032_p4 = pnand %p5031_p2, %p5030_p1 }
  0x39   : > { %p5033_p5 = pneg %p5032_p4 }
  0x3b   : > { %p5038_p7 = pnand %p5036_p6, %p5033_p5 }
  0x3d   : > { %5041 = shalt.err (!%p5038_p7)
}
  0x3e   : > { %s5042_s1 = scalar_lea.vmem %s561_s20, 24576  ;;  %p5050_p9 = scmp.lt.s32.totalorder %s561_s20, %s561_s20 }
  0x3f   : > { %p5043_p8 = scmp.ne.s32.totalorder %s561_s20, %s5042_s1  ;;  %p5051_p3 = scmp.lt.s32.totalorder %s5042_s1, %s5042_s1 }
  0x41   : > { %p5045_p11 = pnand %p5043_p8, %p5031_p2  ;;  %p5052_p13 = por %p5051_p3, %p5050_p9 }
  0x43   : > { %p5046_p12 = pneg %p5045_p11 }
  0x45   : > { %p5053_p10 = pnand %p5052_p13, %p5046_p12 }
  0x47   : > { %5056 = shalt.err (!%p5053_p10)
}
  0x48   : > { %s5190_s3 = smov 384   ;;  %s5191_s29 = smov 24  }
  0x49   : > { %4455 = dma.hbm_to_vmem [thread:$0]  (!%p5388_p0), %s5867_s9, 24576, %s561_s20, [#allocation6], %s5190_s3, %s5190_s3, %s5191_s29  }
  0x4a   : > { %s5192_s27 = smov [#allocation8]   ;;  %s5868_s11 = sld [smem:[#allocation33_spill]] }
  0x4b   : > { %s576_s26 = sshll.u32 %s5192_s27, 4  ;;  %s577_s26 = int_to_ptr.vmem [resolvable:$true] %s576_s26 }
  0x50   : > { %s5057_s16 = scalar_lea.hbm %s5868_s11, 12288 }
  0x51   : > { %p5058_p3 = scmp.ne.s32.totalorder %s5868_s11, %s5057_s16  ;;  %p5064_p13 = scmp.lt.u32.totalorder %s5057_s16, %s5868_s11 }
  0x53   : > { %p5060_p9 = pnand %p5058_p3, %p5031_p2 }
  0x55   : > { %p5061_p10 = pneg %p5060_p9 }
  0x57   : > { %p5066_p1 = pnand %p5064_p13, %p5061_p10 }
  0x59   : > { %5069 = shalt.err (!%p5066_p1)
}
  0x5a   : > { %s5070_s20 = scalar_lea.vmem %s577_s26, 12288  ;;  %p5078_p7 = scmp.lt.s32.totalorder %s577_s26, %s577_s26 }
  0x5b   : > { %p5071_p4 = scmp.ne.s32.totalorder %s577_s26, %s5070_s20  ;;  %p5079_p8 = scmp.lt.s32.totalorder %s5070_s20, %s5070_s20 }
  0x5d   : > { %p5073_p5 = pnand %p5071_p4, %p5031_p2  ;;  %p5080_p11 = por %p5079_p8, %p5078_p7 }
  0x5f   : > { %p5074_p6 = pneg %p5073_p5 }
  0x61   : > { %p5081_p12 = pnand %p5080_p11, %p5074_p6 }
  0x63   : > { %5084 = shalt.err (!%p5081_p12)
}
  0x64   : > { %4458 = dma.hbm_to_vmem [thread:$0]  (!%p5388_p0), %s5868_s11, 12288, %s577_s26, [#allocation9], %s5190_s3, %s5190_s3, %s5191_s29  }
  0x65   : > { %p5869_p3 = scmp.ne.s32.totalorder %s5863_s25, 0 }
  0x66   : > { %p5870_p9 = scmp.ne.s32.totalorder (!%p5869_p3), %s5864_s28, 0 }
  0x67   : > { %643 = sbr.rel (%p5869_p3) target bundleno = 2117 (0x845), region = 92 }
  0x6e   : > { %5146 = dma.done.wait (%p5870_p9), [#allocation6], 24576  }
  0x6f   : > { %5148 = vsyncadd (%p5870_p9), [#allocation6], 4294942720 }
  0x70   : > { %5150 = dma.done.wait (%p5870_p9), [#allocation9], 12288  }
  0x71   : > { %5152 = vsyncadd (%p5870_p9), [#allocation9], 4294955008  ;;  %s5833_s15 = sand.u32 1, %s5163_s22   ;;  %p733_p0 = scmp.lt.s32.totalorder %s5171_s24, 5 }
  0x72   : > { %s3995_s16 = sshll.u32 %s5833_s15, 4  ;;  %p735_p2 = scmp.lt.s32.totalorder %s5175_s2, 1 }
  0x73   : > { %s734_s17 = scalar_select %p733_p0, %s5171_s24, 5 }
  0x74   : > { %s736_s25 = scalar_select %p735_p2, %s5175_s2, 1 }
  0x75   : > { %s3996_s21 = sshll.u32 %s734_s17, 1  ;;  %s5871_s27 = sld [smem:[#allocation27_spill]] }
  0x76   : > { %s738_s3 = sadd.s32 %s3996_s21, %s736_s25  ;;  %s5451_s29 = sshll.u32 %s736_s25, 3 }
  0x77   : > { %s3997_s28 = sshll.u32 %s738_s3, 3  ;;  %s5872_s20 = sld [smem:[#allocation26_spill]] }
  0x78   : > { %s5873_s9 = sld [smem:[#allocation28_spill]]  ;;  %s4341_s21 = sshll.u32 %s736_s25, 4 }
  0x79   : > { %s5469_s2 = scalar_lea.vmem %s5814_s18, %s3997_s28  ;;  %s5874_s10 = sld [smem:[#allocation29_spill]] }
  0x7a   : > { %s765_s30 = scalar_lea.vmem %s5815_s19, %s5451_s29  ;;  %s5478_s1 = scalar_lea.vmem [#allocation10], %s3995_s16 }
  0x7b   : > { %s744_s26 = scalar_lea.vmem %s5871_s27, %s5451_s29  ;;  %p4005_p10 = scmp.ne.s32.totalorder %s5171_s24, 0 }
  0x7c   : > { %v771_v0 = vld [vmem:[%s744_s26] sm:$0xff] (!%p4005_p10)  ;;  %vm772_vm0 = vcmask (!%p4005_p10), 31744  }
  0x7d   : > { %s5460_s14 = scalar_lea.vmem %s5872_s20, %s3997_s28  ;;  %770 = sbr.rel (%p4005_p10) target bundleno = 132 (0x84), region = 104  ;;  %773 = vst.msk [vmem:[#allocation2] sm:$0xff] (!%p4005_p10), %vm772_vm0, %v771_v0 }
  0x7e   : > { %s748_s17 = scalar_lea.vmem %s5873_s9, %s5451_s29 }
  0x7f   : > { %s753_s0 = scalar_lea.vmem %s5874_s10, %s4341_s21  ;;  %v774_v1 = vld [vmem:[%s748_s17] sm:$0xff] (!%p4005_p10) }
  0x80   : > { %v776_v2 = vld [vmem:[%s753_s0] sm:$0xff] (!%p4005_p10)  ;;  %775 = vst.msk [vmem:[#allocation3] sm:$0xff] (!%p4005_p10), %vm772_vm0, %v774_v1  ;;  %v777_v3 = vld [vmem:[%s753_s0 + $0x8] sm:$0xff] (!%p4005_p10) }
  0x81   : > { %778 = vst [vmem:[#allocation4] sm:$0xff] (!%p4005_p10), %v776_v2  ;;  %779 = vst [vmem:[#allocation4 + $0x8] sm:$0xff] (!%p4005_p10), %v777_v3 }
  0x84 PF: > { %s5875_s11 = sld [smem:[#allocation30_spill]]  ;;  %vm791_vm1 = vcmask 1041408   ;;  %v781_v5 = vld [vmem:[#allocation2] sm:$0xff]  ;;  %v5193_v6 = vmov 0.0   ;;  %vm5194_vm2 = vmmov 0   ;;  %vm787_vm3 = vcmask 31744  }
  0x85   : > { %4380 = vmatprep.subr.bf16.mxu0 %v5193_v6  ;;  %4382 = vmatprep.mubr.msk.bf16.mxu0 %vm5194_vm2, %v5193_v6  ;;  %v786_v8 = vpack.c.bf16 %v781_v5, %v781_v5  ;;  %v835_v9 = vld [vmem:[%s5801_s5] sm:$0x3]  ;;  %vm885_vm4 = vcmask 15360   ;;  %s5195_s16 = smov 2   ;;  %s5196_s25 = smov 4   ;;  %v923_v37 = vlaneseq  ;;  %v5198_v52 = vmov 0  }
  0x86   : > { %4386 = vmatprep.subr.bf16.mxu1 %v5193_v6  ;;  %4388 = vmatprep.mubr.msk.bf16.mxu1 %vm5194_vm2, %v5193_v6  ;;  %v841_v10 = vsel %vm791_vm1, %v835_v9, 0  ;;  %v780_v21 = vld [vmem:[%s5460_s14] sm:$0xff]  ;;  %v5197_v35 = vmov 1983009808   ;;  %s5199_s26 = smov 6   ;;  %vm1061_vm7 = vcmask 1040384  }
  0x87   : > { %4387 = vmatpush3.bf16.msra.mxu1 %v841_v10  ;;  %v782_v11 = vld [vmem:[#allocation3] sm:$0xff]  ;;  %v921_v36 = vunpack.c.l.s4 %v5197_v35  ;;  %v5519_v39 = vshrl.u32 %v923_v37, 7  ;;  %v916_v40 = vld [vmem:[%s5803_s7] sm:$0xff]  ;;  %v5200_v54 = vmov 1966171168   ;;  %s5876_s22 = sld [smem:[#allocation32_spill]] }
  0x88   : > { %v899_v12 = vsub.f32 %v781_v5, %v782_v11  ;;  %v919_v42 = vcombine.high %v916_v40, %v916_v40  ;;  %v4012_v53 = vld.sshfl [vmem:[%s5802_s6] sm:$0x33 pattern:$0x75316420]  ;;  %v1043_v55 = vunpack.c.l.s4 %v5200_v54  ;;  %v4547_v1 = vld [vmem:[#allocation5 + $0x4] ss:$24 sps:$4 sm:$0xff]  }
  0x89   : > { %v922_v38 = vunpack.c.0.s8 %v921_v36  ;;  %v1041_v56 = vcombine.high %v4012_v53, %v4012_v53  ;;  %v4550_v2 = vld [vmem:[#allocation5 + $0xc] ss:$24 sps:$4 sm:$0xff]   ;;  %v4580_v35 = vld [vmem:[#allocation5 + $0xfc] ss:$24 sps:$4 sm:$0xff]   ;;  %v4575_v36 = vld [vmem:[#allocation5 + $0xf0] ss:$24 sps:$4 sm:$0xff]  }
  0x8a   : > { %v785_v4 = vld [vmem:[%s5875_s11] sm:$0x3]  ;;  %v900_v13 = vmul.f32 %v899_v12, %v899_v12  ;;  %v1044_v57 = vunpack.c.0.s8 %v1043_v55  ;;  %v4578_v37 = vld [vmem:[#allocation5 + $0xf8] ss:$24 sps:$4 sm:$0xff]   ;;  %v4607_v55 = vld [vmem:[#allocation5 + $0x1e4] ss:$24 sps:$4 sm:$0xff]  }
  0x8b   : > { %v793_v7 = vsel %vm791_vm1, %v785_v4, 0  ;;  %v925_v41 = vsub.s32 %v922_v38, %v5519_v39  ;;  %v4583_v38 = vld [vmem:[#allocation5 + $0x124] ss:$24 sps:$4 sm:$0xff]   ;;  %v4602_v54 = vld [vmem:[#allocation5 + $0x1b8] ss:$24 sps:$4 sm:$0xff]   ;;  %s5877_s29 = sld [smem:[#allocation34_spill]] }
  0x8c   : > { %4381 = vmatpush3.bf16.msra.mxu0 %v793_v7  ;;  %v901_v14 = vsel %vm787_vm3, %v900_v13, 0.0  ;;  %v1047_v58 = vsub.s32 %v1044_v57, %v5519_v39  ;;  %v4545_v13 = vld [vmem:[#allocation5] ss:$24 sps:$4 sm:$0xff]   ;;  %s5878_s20 = sld [smem:[#allocation36_spill]]  ;;  %vm3706_vm10 = vcmask 1043456   ;;  %s5880_s28 = sld [smem:[#allocation35_spill]] }
  0x8d   : > { %902 = vadd.xlane.f32.xlu0 %v901_v14  ;;  %v926_v43 = vrot.slane %v916_v40, %v925_v41  ;;  %v933_v44 = vrot.slane %v919_v42, %v925_v41  ;;  %v4548_v14 = vld [vmem:[#allocation5 + $0x8] ss:$24 sps:$4 sm:$0xff]   ;;  %v4586_v40 = vld [vmem:[#allocation5 + $0x12c] ss:$24 sps:$4 sm:$0xff]   ;;  %s5881_s23 = sld [smem:[#allocation37_spill]]  ;;  %s5882_s17 = sld [smem:[#allocation17_spill]] }
  0x8e   : > { %v1055_v59 = vrot.slane %v1041_v56, %v1047_v58  ;;  %v1048_v60 = vrot.slane %v4012_v53, %v1047_v58  ;;  %v4581_v41 = vld [vmem:[#allocation5 + $0x120] ss:$24 sps:$4 sm:$0xff]   ;;  %v4599_v53 = vld [vmem:[#allocation5 + $0x1b0] ss:$24 sps:$4 sm:$0xff]   ;;  %v4610_v56 = vld [vmem:[#allocation5 + $0x1ec] ss:$24 sps:$4 sm:$0xff]  }
  0x8f   : > { %4383 = vmatmul.mubr.msk.bf16.vlgmr.msra.gmra.mrb[0].mxu0 %vm787_vm3, %v786_v8  ;;  %v934_v46 = vcombine.high %v926_v43, %v926_v43  ;;  %v935_v47 = vcombine.high %v933_v44, %v933_v44  ;;  %v940_v48 = vsel %vm791_vm1, %v926_v43, 0  ;;  %v946_v49 = vsel %vm791_vm1, %v933_v44, 0  ;;  %v4584_v42 = vld [vmem:[#allocation5 + $0x128] ss:$24 sps:$4 sm:$0xff]   ;;  %v4589_v43 = vld [vmem:[#allocation5 + $0x154] ss:$24 sps:$4 sm:$0xff]  }
  0x90   : > { %983 = vmatprep.mubr.bf16.mxu0 %v5198_v52  ;;  %v1063_v61 = vsel %vm1061_vm7, %v1048_v60, 0  ;;  %v1057_v62 = vcombine.high %v1055_v59, %v1055_v59  ;;  %v1056_v63 = vcombine.high %v1048_v60, %v1048_v60  ;;  %v4592_v44 = vld [vmem:[#allocation5 + $0x15c] ss:$24 sps:$4 sm:$0xff]   ;;  %v4605_v57 = vld [vmem:[#allocation5 + $0x1e0] ss:$24 sps:$4 sm:$0xff]   ;;  %vm3697_vm11 = vcmask 48128  }
  0x91   : > { %4008 = vmatprep.subr.msk.bf16.mxu0 %vm791_vm1, %v934_v46  ;;  %4010 = vmatprep.subr.msk.bf16.mxu1 %vm791_vm1, %v935_v47  ;;  %v4590_v46 = vld [vmem:[#allocation5 + $0x158] ss:$24 sps:$4 sm:$0xff]   ;;  %v4595_v47 = vld [vmem:[#allocation5 + $0x184] ss:$24 sps:$4 sm:$0xff]   ;;  %v4608_v58 = vld [vmem:[#allocation5 + $0x1e8] ss:$24 sps:$4 sm:$0xff]  }
  0x92   : > { %952 = vmatpush1.bf16.msra.mxu0 %v940_v48  ;;  %v1069_v0 = vsel %vm1061_vm7, %v1056_v63, 0  ;;  %v4598_v48 = vld [vmem:[#allocation5 + $0x18c] ss:$24 sps:$4 sm:$0xff]   ;;  %v4616_v60 = vld [vmem:[#allocation5 + $0x21c] ss:$24 sps:$4 sm:$0xff]   ;;  %s5883_s21 = sld [smem:[#allocation15_spill]] }
  0x93   : > { %4013 = vmatprep.subr.msk.bf16.mxu0 %vm1061_vm7, %v1055_v59  ;;  %v4613_v59 = vld [vmem:[#allocation5 + $0x214] ss:$24 sps:$4 sm:$0xff]   ;;  %v4619_v63 = vld [vmem:[#allocation5 + $0x244] ss:$24 sps:$4 sm:$0xff]   ;;  %s5884_s3 = sld [smem:[#allocation22_spill]]  ;;  %vm3702_vm12 = vcmask 64512  }
  0x94   : > { %s4342_s0 = sshll.u32 %s5882_s17, 8  ;;  %s3792_s10 = sshll.u32 %s5478_s1, 4  ;;  %s3793_s10 = int_to_ptr.vmem [resolvable:$true] %s3792_s10 }
  0x95   : > { %s5201_s24 = smov [#allocation10]  }
  0x96   : > { %s5089_s15 = sshll.u32 %s5201_s24, 4  ;;  %s5090_s15 = int_to_ptr.vmem [resolvable:$false] %s5089_s15 }
  0x97   : > { %p5092_p6 = scmp.lt.s32.totalorder %s3793_s10, %s5090_s15 }
  0x98   : > { %s5886_s11 = sand.u32 1, %s5883_s21  }
  0x99   : > { %s3772_s12 = scalar_lea.sflag [#allocation7], %s5886_s11  ;;  %p5887_p1 = scmp.ne.s32.totalorder %s5884_s3, 0 }
 0x11a   : > { %v903_v20 = vpop.xlane.xlu0 %902 }
 0x11b   : > { %5001 = vrsqrt.f32 %v903_v20  ;;  %vm906_vm5 = vcmp.eq.f32.partialorder %v903_v20, inf  ;;  %v909_v30 = vand.u32 2147483648, %v903_v20  ;;  %vm908_vm6 = vcmp.eq.f32.partialorder %v903_v20, 0.0 }
 0x125   : > { %v5002_v28 = vpop.eup %5001 }
 0x126   : > { %v905_v31 = vmul.f32 %v5002_v28, %v903_v20  ;;  %v4563_v28 = vld [vmem:[#allocation5 + $0x90] ss:$24 sps:$4 sm:$0xff]  }
 0x128   : > { %v907_v32 = vsel %vm906_vm5, %v903_v20, %v905_v31  ;;  %v4554_v20 = vld [vmem:[#allocation5 + $0x38] ss:$24 sps:$4 sm:$0xff]   ;;  %v4574_v31 = vld [vmem:[#allocation5 + $0xcc] ss:$24 sps:$4 sm:$0xff]  }
 0x129   : > { %v910_v33 = vsel %vm908_vm6, %v909_v30, %v907_v32  ;;  %v4571_v30 = vld [vmem:[#allocation5 + $0xc4] ss:$24 sps:$4 sm:$0xff]   ;;  %v4569_v32 = vld [vmem:[#allocation5 + $0xc0] ss:$24 sps:$4 sm:$0xff]  }
 0x12a   : > { %v911_v34 = vmax.f32 %v910_v33, 1e-12  ;;  %v4572_v33 = vld [vmem:[#allocation5 + $0xc8] ss:$24 sps:$4 sm:$0xff]  }
 0x12c   : > { %5003 = vrcp.f32 %v911_v34  ;;  %v4577_v34 = vld [vmem:[#allocation5 + $0xf4] ss:$24 sps:$4 sm:$0xff]  }
 0x136   : > { %v5004_v45 = vpop.eup %5003 }
 0x137   : > { %v913_v50 = vmul.f32 %v5004_v45, %v899_v12  ;;  %v4587_v45 = vld [vmem:[#allocation5 + $0x150] ss:$24 sps:$4 sm:$0xff]  }
 0x139   : > { %v917_v51 = vpack.c.bf16 %v913_v50, %v913_v50  ;;  %v4596_v50 = vld [vmem:[#allocation5 + $0x188] ss:$24 sps:$4 sm:$0xff]  }
 0x13b   : > { %4009 = vmatmul.mubr.msk.bf16.vlgmr.msra.gmra.mrb[4].mxu0 %vm787_vm3, %v917_v51 }
 0x13c   : > { %1106 = vmatprep.mubr.bf16.mxu0 %v5198_v52  ;;  %1075 = vmatpush1.bf16.msra.mxu0 %v1063_v61  ;;  %v4611_v61 = vld [vmem:[#allocation5 + $0x210] ss:$24 sps:$4 sm:$0xff]  }
 0x13d   : > { %2374 = vmatprep.subr.bf16.mxu0 %v4547_v1  ;;  %v4617_v1 = vld [vmem:[#allocation5 + $0x240] ss:$24 sps:$4 sm:$0xff]  }
 0x162   : > { %v5497_v15 = vpop.f32.mrb[0].mxu0 }
 0x163   : > { %v836_v16 = vpack.c.bf16 %v5497_v15, %v5497_v15  ;;  %3756 = vst.msk [vmem:[%s765_s30] sm:$0xff] %vm787_vm3, %v5497_v15  ;;  %v4384_v17 = vpop.f32.mrb[1].mxu0  ;;  %3752 = vst.msk [vmem:[#allocation3] sm:$0xff] %vm787_vm3, %v5497_v15  ;;  %s5885_s30 = sld [smem:[#allocation39_spill]] }
 0x164   : > { %v832_v18 = vpop.f32.mrb[2].mxu0  ;;  %v4553_v17 = vld [vmem:[#allocation5 + $0x34] ss:$24 sps:$4 sm:$0xff]  }
 0x165   : > { %v4385_v19 = vpop.f32.mrb[3].mxu0  ;;  %4389 = vmatmul.mubr.msk.bf16.vlgmr.msra.gmra.mrb[0].mxu1 %vm787_vm3, %v836_v16  ;;  %v4556_v18 = vld [vmem:[#allocation5 + $0x3c] ss:$24 sps:$4 sm:$0xff]  }
 0x166   : > { %993 = vmatpush1.bf16.msra.mxu1 %v946_v49  ;;  %1024 = vmatprep.mubr.bf16.mxu1 %v5198_v52  ;;  %v4551_v19 = vld [vmem:[#allocation5 + $0x30] ss:$24 sps:$4 sm:$0xff]   ;;  %v4593_v49 = vld [vmem:[#allocation5 + $0x180] ss:$24 sps:$4 sm:$0xff]  }
 0x167   : > { %4015 = vmatprep.subr.msk.bf16.mxu1 %vm1061_vm7, %v1057_v62  ;;  %v4614_v62 = vld [vmem:[#allocation5 + $0x218] ss:$24 sps:$4 sm:$0xff]  }
 0x169   : > { %s5742_s9 = scalar_lea.hbm %s5885_s30, %s4342_s0 }
 0x16d   : > { %4011 = vmatmul.mubr.msk.bf16.vlgmr.msra.gmra.mrb[4].mxu1 %vm787_vm3, %v917_v51  ;;  %v4601_v51 = vld [vmem:[#allocation5 + $0x1b4] ss:$24 sps:$4 sm:$0xff]  }
 0x16e   : > { %1147 = vmatprep.mubr.bf16.mxu1 %v5198_v52  ;;  %1116 = vmatpush1.bf16.msra.mxu1 %v1069_v0  ;;  %v4604_v52 = vld [vmem:[#allocation5 + $0x1bc] ss:$24 sps:$4 sm:$0xff]   ;;  %v4622_v0 = vld [vmem:[#allocation5 + $0x24c] ss:$24 sps:$4 sm:$0xff]  }
 0x16f   : > { %2456 = vmatprep.subr.bf16.mxu1 %v4550_v2  ;;  %v4620_v2 = vld [vmem:[#allocation5 + $0x248] ss:$24 sps:$4 sm:$0xff]  }
 0x238   : > { %v877_v22 = vpop.f32.mrb[0].mxu1 }
 0x239   : > { %v5512_v23 = vsub.f32 %v780_v21, %v877_v22  ;;  %v4390_v24 = vpop.f32.mrb[1].mxu1  ;;  %v4559_v21 = vld [vmem:[#allocation5 + $0x64] ss:$24 sps:$4 sm:$0xff]  }
 0x23a   : > { %v880_v25 = vpop.f32.mrb[2].mxu1  ;;  %v4562_v22 = vld [vmem:[#allocation5 + $0x6c] ss:$24 sps:$4 sm:$0xff]   ;;  %v4557_v24 = vld [vmem:[#allocation5 + $0x60] ss:$24 sps:$4 sm:$0xff]  }
 0x23b   : > { %v4391_v26 = vpop.f32.mrb[3].mxu1  ;;  %3686 = vrot.lane.b32.xlu1 %v5512_v23, %s5195_s16  ;;  %v884_v27 = vmul.f32 %v5512_v23, %v5512_v23  ;;  %v4560_v25 = vld [vmem:[#allocation5 + $0x68] ss:$24 sps:$4 sm:$0xff]   ;;  %s5879_s16 = sld [smem:[#allocation38_spill]] }
 0x23c   : > { %v4565_v26 = vld [vmem:[#allocation5 + $0x94] ss:$24 sps:$4 sm:$0xff]  }
 0x23d   : > { %v886_v29 = vsel %vm885_vm4, %v884_v27, 0.0  ;;  %v4568_v27 = vld [vmem:[#allocation5 + $0x9c] ss:$24 sps:$4 sm:$0xff]  }
 0x23e   : > { %887 = vadd.xlane.f32.xlu0 %v886_v29  ;;  %v4566_v29 = vld [vmem:[#allocation5 + $0x98] ss:$24 sps:$4 sm:$0xff]  }
 0x23f   : > { %3689 = vrot.lane.b32.xlu1 %v5512_v23, %s5196_s25 }
 0x254   : > { %3692 = vrot.lane.b32.xlu0 %v5512_v23, %s5199_s26 }
 0x2cb   : > { %v888_v3 = vpop.xlane.xlu0 %887 }
 0x2cc   : > { %5005 = vrsqrt.f32 %v888_v3  ;;  %vm891_vm8 = vcmp.eq.f32.partialorder %v888_v3, inf  ;;  %v894_v7 = vand.u32 2147483648, %v888_v3  ;;  %vm893_vm9 = vcmp.eq.f32.partialorder %v888_v3, 0.0 }
 0x2d6   : > { %v5006_v4 = vpop.eup %5005 }
 0x2d7   : > { %v890_v5 = vmul.f32 %v5006_v4, %v888_v3  ;;  %v4628_v4 = vld [vmem:[#allocation5 + $0x27c] ss:$24 sps:$4 sm:$0xff]  }
 0x2d9   : > { %v892_v8 = vsel %vm891_vm8, %v888_v3, %v890_v5  ;;  %v4625_v3 = vld [vmem:[#allocation5 + $0x274] ss:$24 sps:$4 sm:$0xff]   ;;  %v4623_v5 = vld [vmem:[#allocation5 + $0x270] ss:$24 sps:$4 sm:$0xff]  }
 0x2da   : > { %v895_v9 = vsel %vm893_vm9, %v894_v7, %v892_v8  ;;  %v4626_v7 = vld [vmem:[#allocation5 + $0x278] ss:$24 sps:$4 sm:$0xff]   ;;  %v985_v8 = vpop.f32.mrb[4].mxu0 }
 0x2db   : > { %v896_v10 = vmax.f32 %v895_v9, 1e-12  ;;  %v1026_v9 = vpop.f32.mrb[4].mxu1 }
 0x2dd   : > { %5007 = vrcp.f32 %v896_v10  ;;  %v987_v10 = vpop.f32.mrb[5].mxu0 }
 0x2e7   : > { %v5008_v11 = vpop.eup %5007 }
 0x2e8   : > { %v898_v12 = vmul.f32 %v5008_v11, %v5512_v23  ;;  %v1028_v11 = vpop.f32.mrb[5].mxu1 }
 0x2ea   : > { %v915_v16 = vpack.c.bf16 %v898_v12, %v898_v12  ;;  %v989_v12 = vpop.f32.mrb[6].mxu0 }
 0x2eb   : > { %v4670_v12 = vld [vmem:[#allocation5 + $0x3cc] ss:$24 sps:$4 sm:$0xff]  }
 0x2ec   : > { %4014 = vmatmul.mubr.msk.bf16.vlgmr.msra.gmra.mrb[8].mxu0 %vm885_vm4, %v915_v16  ;;  %4016 = vmatmul.mubr.msk.bf16.vlgmr.msra.gmra.mrb[8].mxu1 %vm885_vm4, %v915_v16 }
 0x2ed   : > { %2375 = vmatpush1.bf16.msra.mxu0 %v4545_v13  ;;  %2457 = vmatpush1.bf16.msra.mxu1 %v4548_v14  ;;  %v1030_v13 = vpop.f32.mrb[6].mxu1  ;;  %v990_v14 = vpop.f32.mrb[7].mxu0 }
 0x2ee   : > { %2376 = vmatprep.subr.bf16.mxu0 %v4553_v17  ;;  %2458 = vmatprep.subr.bf16.mxu1 %v4556_v18  ;;  %v1031_v16 = vpop.f32.mrb[7].mxu1  ;;  %v4631_v17 = vld [vmem:[#allocation5 + $0x2a4] ss:$24 sps:$4 sm:$0xff]   ;;  %v4629_v18 = vld [vmem:[#allocation5 + $0x2a0] ss:$24 sps:$4 sm:$0xff]  }
 0x2ef   : > { %v4665_v13 = vld [vmem:[#allocation5 + $0x3c0] ss:$24 sps:$4 sm:$0xff]   ;;  %v4673_v16 = vld [vmem:[#allocation5 + $0x3f4] ss:$24 sps:$4 sm:$0xff]  }
 0x2f0   : > { %v4668_v14 = vld [vmem:[#allocation5 + $0x3c8] ss:$24 sps:$4 sm:$0xff]  }
 0x2f1   : > { %2377 = vmatpush1.bf16.msra.mxu0 %v4551_v19  ;;  %2459 = vmatpush1.bf16.msra.mxu1 %v4554_v20  ;;  %v4632_v19 = vld [vmem:[#allocation5 + $0x2a8] ss:$24 sps:$4 sm:$0xff]   ;;  %v4634_v20 = vld [vmem:[#allocation5 + $0x2ac] ss:$24 sps:$4 sm:$0xff]  }
 0x2f2   : > { %2378 = vmatprep.subr.bf16.mxu0 %v4559_v21  ;;  %2460 = vmatprep.subr.bf16.mxu1 %v4562_v22  ;;  %v4637_v21 = vld [vmem:[#allocation5 + $0x2d4] ss:$24 sps:$4 sm:$0xff]  }
 0x2f3   : > { %v4640_v22 = vld [vmem:[#allocation5 + $0x2dc] ss:$24 sps:$4 sm:$0xff]  }
 0x2f5   : > { %2379 = vmatpush1.bf16.msra.mxu0 %v4557_v24  ;;  %2461 = vmatpush1.bf16.msra.mxu1 %v4560_v25  ;;  %v4635_v24 = vld [vmem:[#allocation5 + $0x2d0] ss:$24 sps:$4 sm:$0xff]  }
 0x2f6   : > { %2380 = vmatprep.subr.bf16.mxu0 %v4565_v26  ;;  %2462 = vmatprep.subr.bf16.mxu1 %v4568_v27  ;;  %v4638_v25 = vld [vmem:[#allocation5 + $0x2d8] ss:$24 sps:$4 sm:$0xff]   ;;  %v4643_v26 = vld [vmem:[#allocation5 + $0x304] ss:$24 sps:$4 sm:$0xff]  }
 0x2f7   : > { %v4646_v27 = vld [vmem:[#allocation5 + $0x30c] ss:$24 sps:$4 sm:$0xff]  }
 0x2f9   : > { %2381 = vmatpush1.bf16.msra.mxu0 %v4563_v28  ;;  %2463 = vmatpush1.bf16.msra.mxu1 %v4566_v29  ;;  %v5540_v28 = vsub.s32 0, %v5519_v39  ;;  %v5543_v29 = vsub.s32 2, %v5519_v39 }
 0x2fa   : > { %2382 = vmatprep.subr.bf16.mxu0 %v4571_v30  ;;  %2464 = vmatprep.subr.bf16.mxu1 %v4574_v31  ;;  %v1156_v30 = vld [vmem:[%s5804_s8] sm:$0xf]  ;;  %v5549_v31 = vsub.s32 1, %v5519_v39 }
 0x2fd   : > { %2383 = vmatpush1.bf16.msra.mxu0 %v4569_v32  ;;  %2465 = vmatpush1.bf16.msra.mxu1 %v4572_v33  ;;  %v5552_v32 = vsub.s32 3, %v5519_v39  ;;  %v1161_v33 = vrot.slane %v1156_v30, %v5540_v28 }
 0x2fe   : > { %2384 = vmatprep.subr.bf16.mxu0 %v4577_v34  ;;  %2466 = vmatprep.subr.bf16.mxu1 %v4580_v35  ;;  %v1169_v34 = vrot.slane %v1156_v30, %v5543_v29 }
 0x301   : > { %2385 = vmatpush1.bf16.msra.mxu0 %v4575_v36  ;;  %2467 = vmatpush1.bf16.msra.mxu1 %v4578_v37  ;;  %v1165_v37 = vrot.slane %v1156_v30, %v5549_v31 }
 0x302   : > { %2386 = vmatprep.subr.bf16.mxu0 %v4583_v38  ;;  %2468 = vmatprep.subr.bf16.mxu1 %v4586_v40  ;;  %v1173_v38 = vrot.slane %v1156_v30, %v5552_v32  ;;  %v4686_v30 = vld [vmem:[#allocation5 + $0x458] ss:$24 sps:$4 sm:$0xff]  }
 0x305   : > { %2387 = vmatpush1.bf16.msra.mxu0 %v4581_v41  ;;  %2469 = vmatpush1.bf16.msra.mxu1 %v4584_v42 }
 0x306   : > { %2388 = vmatprep.subr.bf16.mxu0 %v4589_v43  ;;  %2470 = vmatprep.subr.bf16.mxu1 %v4592_v44 }
 0x309   : > { %2389 = vmatpush1.bf16.msra.mxu0 %v4587_v45  ;;  %2471 = vmatpush1.bf16.msra.mxu1 %v4590_v46 }
 0x30a   : > { %2390 = vmatprep.subr.bf16.mxu0 %v4595_v47  ;;  %2472 = vmatprep.subr.bf16.mxu1 %v4598_v48 }
 0x30d   : > { %2391 = vmatpush1.bf16.msra.mxu0 %v4593_v49  ;;  %2473 = vmatpush1.bf16.msra.mxu1 %v4596_v50 }
 0x30e   : > { %2392 = vmatprep.subr.bf16.mxu0 %v4601_v51  ;;  %2474 = vmatprep.subr.bf16.mxu1 %v4604_v52 }
 0x311   : > { %2393 = vmatpush1.bf16.msra.mxu0 %v4599_v53  ;;  %2475 = vmatpush1.bf16.msra.mxu1 %v4602_v54 }
 0x312   : > { %2394 = vmatprep.subr.bf16.mxu0 %v4607_v55  ;;  %2476 = vmatprep.subr.bf16.mxu1 %v4610_v56 }
 0x315   : > { %2395 = vmatpush1.bf16.msra.mxu0 %v4605_v57  ;;  %2477 = vmatpush1.bf16.msra.mxu1 %v4608_v58  ;;  %v4641_v58 = vld [vmem:[#allocation5 + $0x300] ss:$24 sps:$4 sm:$0xff]  }
 0x316   : > { %2396 = vmatprep.subr.bf16.mxu0 %v4613_v59  ;;  %2478 = vmatprep.subr.bf16.mxu1 %v4616_v60  ;;  %v4644_v59 = vld [vmem:[#allocation5 + $0x308] ss:$24 sps:$4 sm:$0xff]  }
 0x319   : > { %2397 = vmatpush1.bf16.msra.mxu0 %v4611_v61  ;;  %2479 = vmatpush1.bf16.msra.mxu1 %v4614_v62  ;;  %v4649_v61 = vld [vmem:[#allocation5 + $0x334] ss:$24 sps:$4 sm:$0xff]  }
 0x31a   : > { %2398 = vmatprep.subr.bf16.mxu0 %v4619_v63  ;;  %2480 = vmatprep.subr.bf16.mxu1 %v4622_v0  ;;  %v4652_v62 = vld [vmem:[#allocation5 + $0x33c] ss:$24 sps:$4 sm:$0xff]   ;;  %v4647_v0 = vld [vmem:[#allocation5 + $0x330] ss:$24 sps:$4 sm:$0xff]  }
 0x31d   : > { %2399 = vmatpush1.bf16.msra.mxu0 %v4617_v1  ;;  %2481 = vmatpush1.bf16.msra.mxu1 %v4620_v2  ;;  %v4650_v1 = vld [vmem:[#allocation5 + $0x338] ss:$24 sps:$4 sm:$0xff]   ;;  %v4655_v2 = vld [vmem:[#allocation5 + $0x364] ss:$24 sps:$4 sm:$0xff]  }
 0x31e   : > { %2400 = vmatprep.subr.bf16.mxu0 %v4625_v3  ;;  %2482 = vmatprep.subr.bf16.mxu1 %v4628_v4  ;;  %v4658_v3 = vld [vmem:[#allocation5 + $0x36c] ss:$24 sps:$4 sm:$0xff]   ;;  %v4653_v4 = vld [vmem:[#allocation5 + $0x360] ss:$24 sps:$4 sm:$0xff]  }
 0x321   : > { %2401 = vmatpush1.bf16.msra.mxu0 %v4623_v5  ;;  %2483 = vmatpush1.bf16.msra.mxu1 %v4626_v7  ;;  %v4656_v5 = vld [vmem:[#allocation5 + $0x368] ss:$24 sps:$4 sm:$0xff]   ;;  %v4661_v7 = vld [vmem:[#allocation5 + $0x394] ss:$24 sps:$4 sm:$0xff]  }
 0x322   : > { %2402 = vmatprep.subr.bf16.mxu0 %v4631_v17  ;;  %2484 = vmatprep.subr.bf16.mxu1 %v4634_v20  ;;  %v4676_v17 = vld [vmem:[#allocation5 + $0x3fc] ss:$24 sps:$4 sm:$0xff]  }
 0x323   : > { %v4679_v20 = vld [vmem:[#allocation5 + $0x424] ss:$24 sps:$4 sm:$0xff]  }
 0x325   : > { %2403 = vmatpush1.bf16.msra.mxu0 %v4629_v18  ;;  %2485 = vmatpush1.bf16.msra.mxu1 %v4632_v19  ;;  %v4671_v18 = vld [vmem:[#allocation5 + $0x3f0] ss:$24 sps:$4 sm:$0xff]  }
 0x326   : > { %2404 = vmatprep.subr.bf16.mxu0 %v4637_v21  ;;  %2486 = vmatprep.subr.bf16.mxu1 %v4640_v22  ;;  %v4674_v19 = vld [vmem:[#allocation5 + $0x3f8] ss:$24 sps:$4 sm:$0xff]   ;;  %v4682_v21 = vld [vmem:[#allocation5 + $0x42c] ss:$24 sps:$4 sm:$0xff]  }
 0x327   : > { %v4677_v22 = vld [vmem:[#allocation5 + $0x420] ss:$24 sps:$4 sm:$0xff]  }
 0x329   : > { %2405 = vmatpush1.bf16.msra.mxu0 %v4635_v24  ;;  %2487 = vmatpush1.bf16.msra.mxu1 %v4638_v25  ;;  %v4680_v24 = vld [vmem:[#allocation5 + $0x428] ss:$24 sps:$4 sm:$0xff]   ;;  %v4685_v25 = vld [vmem:[#allocation5 + $0x454] ss:$24 sps:$4 sm:$0xff]  }
 0x32a   : > { %2415 = vmatprep.subr.bf16.mxu0 %v4643_v26  ;;  %2497 = vmatprep.subr.bf16.mxu1 %v4646_v27  ;;  %v4688_v26 = vld [vmem:[#allocation5 + $0x45c] ss:$24 sps:$4 sm:$0xff]   ;;  %v4683_v27 = vld [vmem:[#allocation5 + $0x450] ss:$24 sps:$4 sm:$0xff]  }
 0x3bf   : > { %v1108_v35 = vpop.f32.mrb[8].mxu0  ;;  %v1149_v36 = vpop.f32.mrb[8].mxu1 }
 0x3c0   : > { %v1109_v40 = vadd.f32 %v1108_v35, %v985_v8  ;;  %v1150_v41 = vadd.f32 %v1149_v36, %v1026_v9  ;;  %v1110_v42 = vpop.f32.mrb[9].mxu0  ;;  %v1151_v43 = vpop.f32.mrb[9].mxu1  ;;  %v4664_v8 = vld [vmem:[#allocation5 + $0x39c] ss:$24 sps:$4 sm:$0xff]   ;;  %v4659_v9 = vld [vmem:[#allocation5 + $0x390] ss:$24 sps:$4 sm:$0xff]  }
 0x3c1   : > { %v1111_v44 = vadd.f32 %v1110_v42, %v987_v10  ;;  %v1152_v45 = vadd.f32 %v1151_v43, %v1028_v11  ;;  %v1112_v46 = vpop.f32.mrb[10].mxu0  ;;  %v1153_v47 = vpop.f32.mrb[10].mxu1  ;;  %v4662_v10 = vld [vmem:[#allocation5 + $0x398] ss:$24 sps:$4 sm:$0xff]   ;;  %v4667_v11 = vld [vmem:[#allocation5 + $0x3c4] ss:$24 sps:$4 sm:$0xff]  }
 0x3c2   : > { %v1178_v48 = vadd.f32 %v1161_v33, %v1109_v40  ;;  %v5558_v49 = vadd.f32 %v1169_v34, %v1150_v41  ;;  %v1113_v50 = vpop.f32.mrb[11].mxu0  ;;  %v1154_v51 = vpop.f32.mrb[11].mxu1  ;;  %v4691_v33 = vld [vmem:[#allocation5 + $0x484] ss:$24 sps:$4 sm:$0xff]   ;;  %v4689_v35 = vld [vmem:[#allocation5 + $0x480] ss:$24 sps:$4 sm:$0xff]  }
 0x3c3   : > { %v1179_v52 = vadd.f32 %v1165_v37, %v1111_v44  ;;  %v1181_v53 = vadd.f32 %v1173_v38, %v1152_v45  ;;  %v4694_v34 = vld [vmem:[#allocation5 + $0x48c] ss:$24 sps:$4 sm:$0xff]   ;;  %v4692_v36 = vld [vmem:[#allocation5 + $0x488] ss:$24 sps:$4 sm:$0xff]   ;;  %v4700_v38 = vld [vmem:[#allocation5 + $0x4bc] ss:$24 sps:$4 sm:$0xff]  }
 0x3c4   : > { %v1182_v54 = vmax.f32 %v1178_v48, 0.0  ;;  %v4697_v37 = vld [vmem:[#allocation5 + $0x4b4] ss:$24 sps:$4 sm:$0xff]   ;;  %v4695_v40 = vld [vmem:[#allocation5 + $0x4b0] ss:$24 sps:$4 sm:$0xff]  }
 0x3c5   : > { %v1183_v55 = vmax.f32 %v1179_v52, 0.0  ;;  %v1185_v56 = vmax.f32 %v1181_v53, 0.0  ;;  %v4698_v41 = vld [vmem:[#allocation5 + $0x4b8] ss:$24 sps:$4 sm:$0xff]   ;;  %v4703_v42 = vld [vmem:[#allocation5 + $0x4e4] ss:$24 sps:$4 sm:$0xff]  }
 0x3c6   : > { %v5562_v60 = vpack.c.bf16 %v1182_v54, %v1182_v54  ;;  %v4706_v43 = vld [vmem:[#allocation5 + $0x4ec] ss:$24 sps:$4 sm:$0xff]   ;;  %v4701_v44 = vld [vmem:[#allocation5 + $0x4e0] ss:$24 sps:$4 sm:$0xff]   ;;  %v4712_v47 = vld [vmem:[#allocation5 + $0x51c] ss:$24 sps:$4 sm:$0xff]  }
 0x3c7   : > { %v5560_v57 = vpack.c.bf16 %v1183_v55, %v1183_v55  ;;  %v5566_v63 = vpack.c.bf16 %v1185_v56, %v1185_v56  ;;  %v4704_v45 = vld [vmem:[#allocation5 + $0x4e8] ss:$24 sps:$4 sm:$0xff]   ;;  %v4709_v46 = vld [vmem:[#allocation5 + $0x514] ss:$24 sps:$4 sm:$0xff]   ;;  %v4710_v50 = vld [vmem:[#allocation5 + $0x518] ss:$24 sps:$4 sm:$0xff]  }
 0x3c8   : > { %v4707_v48 = vld [vmem:[#allocation5 + $0x510] ss:$24 sps:$4 sm:$0xff]   ;;  %v4715_v51 = vld [vmem:[#allocation5 + $0x544] ss:$24 sps:$4 sm:$0xff]   ;;  %v4713_v53 = vld [vmem:[#allocation5 + $0x540] ss:$24 sps:$4 sm:$0xff]  }
 0x3c9   : > { %2406 = vmatprep.mubr.bf16.mxu0 %v5560_v57  ;;  %2488 = vmatprep.mubr.bf16.mxu1 %v5560_v57  ;;  %v4718_v52 = vld [vmem:[#allocation5 + $0x54c] ss:$24 sps:$4 sm:$0xff]   ;;  %v4716_v54 = vld [vmem:[#allocation5 + $0x548] ss:$24 sps:$4 sm:$0xff]   ;;  %v4724_v56 = vld [vmem:[#allocation5 + $0x57c] ss:$24 sps:$4 sm:$0xff]  }
 0x3ca   : > { %2407 = vmatmul.mubr.bf16.vlgmr.msra.gmra.mrb[12].mxu0 %v5562_v60  ;;  %2489 = vmatmul.mubr.bf16.vlgmr.msra.gmra.mrb[12].mxu1 %v5562_v60  ;;  %v4721_v55 = vld [vmem:[#allocation5 + $0x574] ss:$24 sps:$4 sm:$0xff]  }
 0x3cb   : > { %2416 = vmatpush1.bf16.msra.mxu0 %v4641_v58  ;;  %2498 = vmatpush1.bf16.msra.mxu1 %v4644_v59  ;;  %v4719_v58 = vld [vmem:[#allocation5 + $0x570] ss:$24 sps:$4 sm:$0xff]  }
 0x3cc   : > { %2447 = vmatprep.mubr.bf16.mxu0 %v5566_v63  ;;  %2529 = vmatprep.mubr.bf16.mxu1 %v5566_v63  ;;  %v4722_v59 = vld [vmem:[#allocation5 + $0x578] ss:$24 sps:$4 sm:$0xff]  }
 0x3cd   : > { %2417 = vmatprep.subr.bf16.mxu0 %v4649_v61  ;;  %2499 = vmatprep.subr.bf16.mxu1 %v4652_v62  ;;  %v4727_v61 = vld [vmem:[#allocation5 + $0x5a4] ss:$24 sps:$4 sm:$0xff]  }
 0x3ce   : > { %v4730_v62 = vld [vmem:[#allocation5 + $0x5ac] ss:$24 sps:$4 sm:$0xff]  }
 0x3cf   : > { %2418 = vmatpush1.bf16.msra.mxu0 %v4647_v0  ;;  %2500 = vmatpush1.bf16.msra.mxu1 %v4650_v1  ;;  %v4725_v0 = vld [vmem:[#allocation5 + $0x5a0] ss:$24 sps:$4 sm:$0xff]  }
 0x3d0   : > { %2419 = vmatprep.subr.bf16.mxu0 %v4655_v2  ;;  %2501 = vmatprep.subr.bf16.mxu1 %v4658_v3  ;;  %v4728_v1 = vld [vmem:[#allocation5 + $0x5a8] ss:$24 sps:$4 sm:$0xff]   ;;  %v4733_v2 = vld [vmem:[#allocation5 + $0x5d4] ss:$24 sps:$4 sm:$0xff]  }
 0x3d1   : > { %v4736_v3 = vld [vmem:[#allocation5 + $0x5dc] ss:$24 sps:$4 sm:$0xff]  }
 0x3d3   : > { %2420 = vmatpush1.bf16.msra.mxu0 %v4653_v4  ;;  %2502 = vmatpush1.bf16.msra.mxu1 %v4656_v5  ;;  %v4731_v4 = vld [vmem:[#allocation5 + $0x5d0] ss:$24 sps:$4 sm:$0xff]  }
 0x3d4   : > { %2421 = vmatprep.subr.bf16.mxu0 %v4661_v7  ;;  %2503 = vmatprep.subr.bf16.mxu1 %v4664_v8  ;;  %v4734_v5 = vld [vmem:[#allocation5 + $0x5d8] ss:$24 sps:$4 sm:$0xff]   ;;  %v1184_v7 = vmax.f32 %v5558_v49, 0.0  ;;  %v4739_v8 = vld [vmem:[#allocation5 + $0x14] ss:$24 sps:$4 sm:$0xff]  }
 0x3d5   : > { %v4743_v49 = vld [vmem:[#allocation5 + $0x40] ss:$24 sps:$4 sm:$0xff]  }
 0x3d7   : > { %2422 = vmatpush1.bf16.msra.mxu0 %v4659_v9  ;;  %2504 = vmatpush1.bf16.msra.mxu1 %v4662_v10  ;;  %v4742_v9 = vld [vmem:[#allocation5 + $0x314] ss:$24 sps:$4 sm:$0xff]   ;;  %v4737_v10 = vld [vmem:[#allocation5 + $0x10] ss:$24 sps:$4 sm:$0xff]  }
 0x3d8   : > { %2423 = vmatprep.subr.bf16.mxu0 %v4667_v11  ;;  %2505 = vmatprep.subr.bf16.mxu1 %v4670_v12  ;;  %v5573_v11 = vpack.c.bf16 %v1184_v7, %v1184_v7  ;;  %v4740_v12 = vld [vmem:[#allocation5 + $0x310] ss:$24 sps:$4 sm:$0xff]   ;;  %v4820_v7 = vld [vmem:[#allocation5 + $0x584] ss:$24 sps:$4 sm:$0xff]  }
 0x3db   : > { %2424 = vmatpush1.bf16.msra.mxu0 %v4665_v13  ;;  %2506 = vmatpush1.bf16.msra.mxu1 %v4668_v14  ;;  %v4745_v13 = vld [vmem:[#allocation5 + $0x44] ss:$24 sps:$4 sm:$0xff]  }
 0x3dc   : > { %2425 = vmatprep.subr.bf16.mxu0 %v4673_v16  ;;  %2507 = vmatprep.subr.bf16.mxu1 %v4676_v17  ;;  %v4748_v14 = vld [vmem:[#allocation5 + $0x344] ss:$24 sps:$4 sm:$0xff]   ;;  %v4746_v16 = vld [vmem:[#allocation5 + $0x340] ss:$24 sps:$4 sm:$0xff]   ;;  %v4751_v17 = vld [vmem:[#allocation5 + $0x74] ss:$24 sps:$4 sm:$0xff]  }
 0x3df   : > { %2426 = vmatpush1.bf16.msra.mxu0 %v4671_v18  ;;  %2508 = vmatpush1.bf16.msra.mxu1 %v4674_v19  ;;  %v4754_v18 = vld [vmem:[#allocation5 + $0x374] ss:$24 sps:$4 sm:$0xff]   ;;  %v4749_v19 = vld [vmem:[#allocation5 + $0x70] ss:$24 sps:$4 sm:$0xff]  }
 0x3e0   : > { %2427 = vmatprep.subr.bf16.mxu0 %v4679_v20  ;;  %2509 = vmatprep.subr.bf16.mxu1 %v4682_v21  ;;  %v4752_v20 = vld [vmem:[#allocation5 + $0x370] ss:$24 sps:$4 sm:$0xff]   ;;  %v4757_v21 = vld [vmem:[#allocation5 + $0xa4] ss:$24 sps:$4 sm:$0xff]  }
 0x3e3   : > { %2428 = vmatpush1.bf16.msra.mxu0 %v4677_v22  ;;  %2510 = vmatpush1.bf16.msra.mxu1 %v4680_v24  ;;  %v4760_v22 = vld [vmem:[#allocation5 + $0x3a4] ss:$24 sps:$4 sm:$0xff]   ;;  %v4755_v24 = vld [vmem:[#allocation5 + $0xa0] ss:$24 sps:$4 sm:$0xff]  }
 0x3e4   : > { %2429 = vmatprep.subr.bf16.mxu0 %v4685_v25  ;;  %2511 = vmatprep.subr.bf16.mxu1 %v4688_v26  ;;  %v4763_v25 = vld [vmem:[#allocation5 + $0xd4] ss:$24 sps:$4 sm:$0xff]   ;;  %v4761_v26 = vld [vmem:[#allocation5 + $0xd0] ss:$24 sps:$4 sm:$0xff]  }
 0x3e7   : > { %2430 = vmatpush1.bf16.msra.mxu0 %v4683_v27  ;;  %2512 = vmatpush1.bf16.msra.mxu1 %v4686_v30  ;;  %v4764_v27 = vld [vmem:[#allocation5 + $0x3d0] ss:$24 sps:$4 sm:$0xff]   ;;  %v4769_v30 = vld [vmem:[#allocation5 + $0x104] ss:$24 sps:$4 sm:$0xff]  }
 0x3e8   : > { %2431 = vmatprep.subr.bf16.mxu0 %v4691_v33  ;;  %2513 = vmatprep.subr.bf16.mxu1 %v4694_v34  ;;  %v4772_v33 = vld [vmem:[#allocation5 + $0x404] ss:$24 sps:$4 sm:$0xff]   ;;  %v4767_v34 = vld [vmem:[#allocation5 + $0x100] ss:$24 sps:$4 sm:$0xff]  }
 0x3eb   : > { %2432 = vmatpush1.bf16.msra.mxu0 %v4689_v35  ;;  %2514 = vmatpush1.bf16.msra.mxu1 %v4692_v36  ;;  %v4770_v35 = vld [vmem:[#allocation5 + $0x400] ss:$24 sps:$4 sm:$0xff]   ;;  %v4775_v36 = vld [vmem:[#allocation5 + $0x134] ss:$24 sps:$4 sm:$0xff]  }
 0x3ec   : > { %2433 = vmatprep.subr.bf16.mxu0 %v4697_v37  ;;  %2515 = vmatprep.subr.bf16.mxu1 %v4700_v38  ;;  %v4778_v37 = vld [vmem:[#allocation5 + $0x434] ss:$24 sps:$4 sm:$0xff]   ;;  %v4773_v38 = vld [vmem:[#allocation5 + $0x130] ss:$24 sps:$4 sm:$0xff]  }
 0x3ef   : > { %2434 = vmatpush1.bf16.msra.mxu0 %v4695_v40  ;;  %2516 = vmatpush1.bf16.msra.mxu1 %v4698_v41  ;;  %v4776_v40 = vld [vmem:[#allocation5 + $0x430] ss:$24 sps:$4 sm:$0xff]   ;;  %v4781_v41 = vld [vmem:[#allocation5 + $0x164] ss:$24 sps:$4 sm:$0xff]  }
 0x3f0   : > { %2435 = vmatprep.subr.bf16.mxu0 %v4703_v42  ;;  %2517 = vmatprep.subr.bf16.mxu1 %v4706_v43  ;;  %v4784_v42 = vld [vmem:[#allocation5 + $0x464] ss:$24 sps:$4 sm:$0xff]   ;;  %v4779_v43 = vld [vmem:[#allocation5 + $0x160] ss:$24 sps:$4 sm:$0xff]  }
 0x3f3   : > { %2436 = vmatpush1.bf16.msra.mxu0 %v4701_v44  ;;  %2518 = vmatpush1.bf16.msra.mxu1 %v4704_v45  ;;  %v4782_v44 = vld [vmem:[#allocation5 + $0x460] ss:$24 sps:$4 sm:$0xff]   ;;  %v4787_v45 = vld [vmem:[#allocation5 + $0x194] ss:$24 sps:$4 sm:$0xff]  }
 0x3f4   : > { %2437 = vmatprep.subr.bf16.mxu0 %v4709_v46  ;;  %2519 = vmatprep.subr.bf16.mxu1 %v4712_v47  ;;  %v4790_v46 = vld [vmem:[#allocation5 + $0x494] ss:$24 sps:$4 sm:$0xff]   ;;  %v4785_v47 = vld [vmem:[#allocation5 + $0x190] ss:$24 sps:$4 sm:$0xff]  }
 0x3f7   : > { %2438 = vmatpush1.bf16.msra.mxu0 %v4707_v48  ;;  %2520 = vmatpush1.bf16.msra.mxu1 %v4710_v50  ;;  %v4788_v48 = vld [vmem:[#allocation5 + $0x490] ss:$24 sps:$4 sm:$0xff]   ;;  %v4793_v50 = vld [vmem:[#allocation5 + $0x1c4] ss:$24 sps:$4 sm:$0xff]  }
 0x3f8   : > { %2439 = vmatprep.subr.bf16.mxu0 %v4715_v51  ;;  %2521 = vmatprep.subr.bf16.mxu1 %v4718_v52  ;;  %v4796_v51 = vld [vmem:[#allocation5 + $0x4c4] ss:$24 sps:$4 sm:$0xff]   ;;  %v4791_v52 = vld [vmem:[#allocation5 + $0x1c0] ss:$24 sps:$4 sm:$0xff]  }
 0x3fb   : > { %2440 = vmatpush1.bf16.msra.mxu0 %v4713_v53  ;;  %2522 = vmatpush1.bf16.msra.mxu1 %v4716_v54  ;;  %v4794_v53 = vld [vmem:[#allocation5 + $0x4c0] ss:$24 sps:$4 sm:$0xff]   ;;  %v4799_v54 = vld [vmem:[#allocation5 + $0x1f4] ss:$24 sps:$4 sm:$0xff]  }
 0x3fc   : > { %2441 = vmatprep.subr.bf16.mxu0 %v4721_v55  ;;  %2523 = vmatprep.subr.bf16.mxu1 %v4724_v56  ;;  %v4802_v55 = vld [vmem:[#allocation5 + $0x4f4] ss:$24 sps:$4 sm:$0xff]   ;;  %v4797_v56 = vld [vmem:[#allocation5 + $0x1f0] ss:$24 sps:$4 sm:$0xff]  }
 0x3ff   : > { %2442 = vmatpush1.bf16.msra.mxu0 %v4719_v58  ;;  %2524 = vmatpush1.bf16.msra.mxu1 %v4722_v59  ;;  %v4800_v58 = vld [vmem:[#allocation5 + $0x4f0] ss:$24 sps:$4 sm:$0xff]   ;;  %v4805_v59 = vld [vmem:[#allocation5 + $0x224] ss:$24 sps:$4 sm:$0xff]  }
 0x400   : > { %2443 = vmatprep.subr.bf16.mxu0 %v4727_v61  ;;  %2525 = vmatprep.subr.bf16.mxu1 %v4730_v62  ;;  %v4808_v61 = vld [vmem:[#allocation5 + $0x524] ss:$24 sps:$4 sm:$0xff]   ;;  %v4803_v62 = vld [vmem:[#allocation5 + $0x220] ss:$24 sps:$4 sm:$0xff]  }
 0x403   : > { %2444 = vmatpush1.bf16.msra.mxu0 %v4725_v0  ;;  %2526 = vmatpush1.bf16.msra.mxu1 %v4728_v1  ;;  %v4806_v0 = vld [vmem:[#allocation5 + $0x520] ss:$24 sps:$4 sm:$0xff]   ;;  %v4811_v1 = vld [vmem:[#allocation5 + $0x254] ss:$24 sps:$4 sm:$0xff]  }
 0x404   : > { %2445 = vmatprep.subr.bf16.mxu0 %v4733_v2  ;;  %2527 = vmatprep.subr.bf16.mxu1 %v4736_v3  ;;  %v4814_v2 = vld [vmem:[#allocation5 + $0x554] ss:$24 sps:$4 sm:$0xff]   ;;  %v4809_v3 = vld [vmem:[#allocation5 + $0x250] ss:$24 sps:$4 sm:$0xff]  }
 0x407   : > { %2446 = vmatpush1.bf16.msra.mxu0 %v4731_v4  ;;  %2528 = vmatpush1.bf16.msra.mxu1 %v4734_v5  ;;  %v4812_v4 = vld [vmem:[#allocation5 + $0x550] ss:$24 sps:$4 sm:$0xff]   ;;  %v4817_v5 = vld [vmem:[#allocation5 + $0x284] ss:$24 sps:$4 sm:$0xff]  }
 0x408   : > { %2538 = vmatprep.subr.bf16.mxu0 %v4739_v8  ;;  %2579 = vmatprep.subr.bf16.mxu1 %v4742_v9  ;;  %v4815_v8 = vld [vmem:[#allocation5 + $0x280] ss:$24 sps:$4 sm:$0xff]  }
 0x409   : > { %v4818_v9 = vld [vmem:[#allocation5 + $0x580] ss:$24 sps:$4 sm:$0xff]  }
 0x40a   : > { %2448 = vmatmul.mubr.bf16.vlgmr.msra.gmra.mrb[12].mxu0 %v5573_v11  ;;  %2530 = vmatmul.mubr.bf16.vlgmr.msra.gmra.mrb[12].mxu1 %v5573_v11 }
 0x40b   : > { %2539 = vmatpush1.bf16.msra.mxu0 %v4737_v10  ;;  %2570 = vmatprep.mubr.bf16.mxu0 %v5560_v57  ;;  %v4758_v57 = vld [vmem:[#allocation5 + $0x3a0] ss:$24 sps:$4 sm:$0xff]   ;;  %v4823_v10 = vld [vmem:[#allocation5 + $0x2b4] ss:$24 sps:$4 sm:$0xff]  }
 0x40c   : > { %2580 = vmatpush1.bf16.msra.mxu1 %v4740_v12  ;;  %2611 = vmatprep.mubr.bf16.mxu1 %v5566_v63  ;;  %v4766_v63 = vld [vmem:[#allocation5 + $0x3d4] ss:$24 sps:$4 sm:$0xff]  }
 0x40d   : > { %2540 = vmatprep.subr.bf16.mxu0 %v4745_v13  ;;  %2581 = vmatprep.subr.bf16.mxu1 %v4748_v14  ;;  %v4826_v12 = vld [vmem:[#allocation5 + $0x5b4] ss:$24 sps:$4 sm:$0xff]   ;;  %v4821_v13 = vld [vmem:[#allocation5 + $0x2b0] ss:$24 sps:$4 sm:$0xff]  }
 0x40e   : > { %v4824_v14 = vld [vmem:[#allocation5 + $0x5b0] ss:$24 sps:$4 sm:$0xff]  }
 0x40f   : > { %2541 = vmatpush1.bf16.msra.mxu0 %v4743_v49  ;;  %v4829_v49 = vld [vmem:[#allocation5 + $0x2e4] ss:$24 sps:$4 sm:$0xff]  }
 0x410   : > { %2582 = vmatpush1.bf16.msra.mxu1 %v4746_v16  ;;  %2542 = vmatprep.subr.bf16.mxu0 %v4751_v17  ;;  %v4832_v16 = vld [vmem:[#allocation5 + $0x5e4] ss:$24 sps:$4 sm:$0xff]   ;;  %v4827_v17 = vld [vmem:[#allocation5 + $0x2e0] ss:$24 sps:$4 sm:$0xff]  }
 0x411   : > { %2583 = vmatprep.subr.bf16.mxu1 %v4754_v18  ;;  %v4830_v18 = vld [vmem:[#allocation5 + $0x5e0] ss:$24 sps:$4 sm:$0xff]  }
 0x413   : > { %2543 = vmatpush1.bf16.msra.mxu0 %v4749_v19  ;;  %v4835_v19 = vld [vmem:[#allocation8 + $0x4] ss:$24 sps:$4 sm:$0xff]  }
 0x414   : > { %2584 = vmatpush1.bf16.msra.mxu1 %v4752_v20  ;;  %2544 = vmatprep.subr.bf16.mxu0 %v4757_v21  ;;  %v4838_v20 = vld [vmem:[#allocation8 + $0xc] ss:$24 sps:$4 sm:$0xff]   ;;  %v5579_v21 = vld [vmem:[#allocation4 + $0x8] sm:$0xff] }
 0x415   : > { %2585 = vmatprep.subr.bf16.mxu1 %v4760_v22  ;;  %v4833_v22 = vld [vmem:[#allocation8] ss:$24 sps:$4 sm:$0xff]  }
 0x417   : > { %2545 = vmatpush1.bf16.msra.mxu0 %v4755_v24  ;;  %v4836_v24 = vld [vmem:[#allocation8 + $0x8] ss:$24 sps:$4 sm:$0xff]  }
 0x418   : > { %2586 = vmatpush1.bf16.msra.mxu1 %v4758_v57  ;;  %2546 = vmatprep.subr.bf16.mxu0 %v4763_v25  ;;  %v4841_v57 = vld [vmem:[#allocation8 + $0x34] ss:$24 sps:$4 sm:$0xff]  }
 0x419   : > { %2587 = vmatprep.subr.bf16.mxu1 %v4766_v63  ;;  %v4844_v25 = vld [vmem:[#allocation8 + $0x3c] ss:$24 sps:$4 sm:$0xff]   ;;  %v5583_v63 = vpack.c.bf16 %v5579_v21, %v5579_v21 }
 0x41b   : > { %2547 = vmatpush1.bf16.msra.mxu0 %v4761_v26  ;;  %v4839_v26 = vld [vmem:[#allocation8 + $0x30] ss:$24 sps:$4 sm:$0xff]  }
 0x41c   : > { %2588 = vmatpush1.bf16.msra.mxu1 %v4764_v27  ;;  %2548 = vmatprep.subr.bf16.mxu0 %v4769_v30  ;;  %v4842_v27 = vld [vmem:[#allocation8 + $0x38] ss:$24 sps:$4 sm:$0xff]   ;;  %v4847_v30 = vld [vmem:[#allocation8 + $0x64] ss:$24 sps:$4 sm:$0xff]  }
 0x41d   : > { %2589 = vmatprep.subr.bf16.mxu1 %v4772_v33  ;;  %v4850_v33 = vld [vmem:[#allocation8 + $0x6c] ss:$24 sps:$4 sm:$0xff]  }
 0x41f   : > { %2549 = vmatpush1.bf16.msra.mxu0 %v4767_v34  ;;  %v4845_v34 = vld [vmem:[#allocation8 + $0x60] ss:$24 sps:$4 sm:$0xff]  }
 0x420   : > { %2590 = vmatpush1.bf16.msra.mxu1 %v4770_v35  ;;  %2550 = vmatprep.subr.bf16.mxu0 %v4775_v36  ;;  %v4848_v35 = vld [vmem:[#allocation8 + $0x68] ss:$24 sps:$4 sm:$0xff]  }
 0x421   : > { %2591 = vmatprep.subr.bf16.mxu1 %v4778_v37  ;;  %v4851_v36 = vld [vmem:[#allocation8 + $0x90] ss:$24 sps:$4 sm:$0xff]  }
 0x422   : > { %v4854_v37 = vld [vmem:[#allocation8 + $0x98] ss:$24 sps:$4 sm:$0xff]  }
 0x423   : > { %2551 = vmatpush1.bf16.msra.mxu0 %v4773_v38  ;;  %v4859_v38 = vld [vmem:[#allocation8 + $0xc4] ss:$24 sps:$4 sm:$0xff]  }
 0x424   : > { %2592 = vmatpush1.bf16.msra.mxu1 %v4776_v40  ;;  %2552 = vmatprep.subr.bf16.mxu0 %v4781_v41  ;;  %v4862_v40 = vld [vmem:[#allocation8 + $0xcc] ss:$24 sps:$4 sm:$0xff]   ;;  %v4857_v41 = vld [vmem:[#allocation8 + $0xc0] ss:$24 sps:$4 sm:$0xff]  }
 0x425   : > { %2593 = vmatprep.subr.bf16.mxu1 %v4784_v42  ;;  %v4860_v42 = vld [vmem:[#allocation8 + $0xc8] ss:$24 sps:$4 sm:$0xff]  }
 0x427   : > { %2553 = vmatpush1.bf16.msra.mxu0 %v4779_v43  ;;  %v4865_v43 = vld [vmem:[#allocation8 + $0xf4] ss:$24 sps:$4 sm:$0xff]  }
 0x428   : > { %2594 = vmatpush1.bf16.msra.mxu1 %v4782_v44  ;;  %2554 = vmatprep.subr.bf16.mxu0 %v4787_v45  ;;  %v4868_v44 = vld [vmem:[#allocation8 + $0xfc] ss:$24 sps:$4 sm:$0xff]   ;;  %v4863_v45 = vld [vmem:[#allocation8 + $0xf0] ss:$24 sps:$4 sm:$0xff]  }
 0x429   : > { %2595 = vmatprep.subr.bf16.mxu1 %v4790_v46  ;;  %v4866_v46 = vld [vmem:[#allocation8 + $0xf8] ss:$24 sps:$4 sm:$0xff]  }
 0x42b   : > { %2555 = vmatpush1.bf16.msra.mxu0 %v4785_v47  ;;  %v4871_v47 = vld [vmem:[#allocation8 + $0x124] ss:$24 sps:$4 sm:$0xff]  }
 0x42c   : > { %2596 = vmatpush1.bf16.msra.mxu1 %v4788_v48  ;;  %2556 = vmatprep.subr.bf16.mxu0 %v4793_v50  ;;  %v4874_v48 = vld [vmem:[#allocation8 + $0x12c] ss:$24 sps:$4 sm:$0xff]   ;;  %v4869_v50 = vld [vmem:[#allocation8 + $0x120] ss:$24 sps:$4 sm:$0xff]  }
 0x42d   : > { %2597 = vmatprep.subr.bf16.mxu1 %v4796_v51  ;;  %v4872_v51 = vld [vmem:[#allocation8 + $0x128] ss:$24 sps:$4 sm:$0xff]  }
 0x42f   : > { %2557 = vmatpush1.bf16.msra.mxu0 %v4791_v52  ;;  %v4877_v52 = vld [vmem:[#allocation8 + $0x154] ss:$24 sps:$4 sm:$0xff]  }
 0x430   : > { %2598 = vmatpush1.bf16.msra.mxu1 %v4794_v53  ;;  %2558 = vmatprep.subr.bf16.mxu0 %v4799_v54  ;;  %v4880_v53 = vld [vmem:[#allocation8 + $0x15c] ss:$24 sps:$4 sm:$0xff]   ;;  %v4875_v54 = vld [vmem:[#allocation8 + $0x150] ss:$24 sps:$4 sm:$0xff]  }
 0x431   : > { %2599 = vmatprep.subr.bf16.mxu1 %v4802_v55  ;;  %v4878_v55 = vld [vmem:[#allocation8 + $0x158] ss:$24 sps:$4 sm:$0xff]  }
 0x433   : > { %2559 = vmatpush1.bf16.msra.mxu0 %v4797_v56  ;;  %v4883_v56 = vld [vmem:[#allocation8 + $0x184] ss:$24 sps:$4 sm:$0xff]  }
 0x434   : > { %2600 = vmatpush1.bf16.msra.mxu1 %v4800_v58  ;;  %2560 = vmatprep.subr.bf16.mxu0 %v4805_v59  ;;  %v4886_v58 = vld [vmem:[#allocation8 + $0x18c] ss:$24 sps:$4 sm:$0xff]   ;;  %v4881_v59 = vld [vmem:[#allocation8 + $0x180] ss:$24 sps:$4 sm:$0xff]  }
 0x435   : > { %2601 = vmatprep.subr.bf16.mxu1 %v4808_v61  ;;  %v4884_v61 = vld [vmem:[#allocation8 + $0x188] ss:$24 sps:$4 sm:$0xff]  }
 0x437   : > { %2561 = vmatpush1.bf16.msra.mxu0 %v4803_v62  ;;  %v4889_v62 = vld [vmem:[#allocation8 + $0x1b4] ss:$24 sps:$4 sm:$0xff]  }
 0x438   : > { %2602 = vmatpush1.bf16.msra.mxu1 %v4806_v0  ;;  %2562 = vmatprep.subr.bf16.mxu0 %v4811_v1  ;;  %v4892_v0 = vld [vmem:[#allocation8 + $0x1bc] ss:$24 sps:$4 sm:$0xff]   ;;  %v4887_v1 = vld [vmem:[#allocation8 + $0x1b0] ss:$24 sps:$4 sm:$0xff]  }
 0x439   : > { %2603 = vmatprep.subr.bf16.mxu1 %v4814_v2  ;;  %v4890_v2 = vld [vmem:[#allocation8 + $0x1b8] ss:$24 sps:$4 sm:$0xff]  }
 0x43b   : > { %2563 = vmatpush1.bf16.msra.mxu0 %v4809_v3  ;;  %v4895_v3 = vld [vmem:[#allocation8 + $0x1e4] ss:$24 sps:$4 sm:$0xff]  }
 0x43c   : > { %2604 = vmatpush1.bf16.msra.mxu1 %v4812_v4  ;;  %2564 = vmatprep.subr.bf16.mxu0 %v4817_v5  ;;  %v4898_v4 = vld [vmem:[#allocation8 + $0x1ec] ss:$24 sps:$4 sm:$0xff]   ;;  %v4893_v5 = vld [vmem:[#allocation8 + $0x1e0] ss:$24 sps:$4 sm:$0xff]  }
 0x43d   : > { %2605 = vmatprep.subr.bf16.mxu1 %v4820_v7  ;;  %v4896_v7 = vld [vmem:[#allocation8 + $0x1e8] ss:$24 sps:$4 sm:$0xff]  }
 0x43f   : > { %2565 = vmatpush1.bf16.msra.mxu0 %v4815_v8  ;;  %v4901_v8 = vld [vmem:[#allocation8 + $0x214] ss:$24 sps:$4 sm:$0xff]  }
 0x440   : > { %2606 = vmatpush1.bf16.msra.mxu1 %v4818_v9  ;;  %2566 = vmatprep.subr.bf16.mxu0 %v4823_v10  ;;  %v4904_v9 = vld [vmem:[#allocation8 + $0x21c] ss:$24 sps:$4 sm:$0xff]   ;;  %v4899_v10 = vld [vmem:[#allocation8 + $0x210] ss:$24 sps:$4 sm:$0xff]  }
 0x441   : > { %2607 = vmatprep.subr.bf16.mxu1 %v4826_v12  ;;  %v4902_v12 = vld [vmem:[#allocation8 + $0x218] ss:$24 sps:$4 sm:$0xff]  }
 0x443   : > { %2567 = vmatpush1.bf16.msra.mxu0 %v4821_v13  ;;  %v4907_v13 = vld [vmem:[#allocation8 + $0x244] ss:$24 sps:$4 sm:$0xff]  }
 0x444   : > { %2608 = vmatpush1.bf16.msra.mxu1 %v4824_v14  ;;  %2568 = vmatprep.subr.bf16.mxu0 %v4829_v49  ;;  %v4910_v14 = vld [vmem:[#allocation8 + $0x24c] ss:$24 sps:$4 sm:$0xff]   ;;  %v4905_v49 = vld [vmem:[#allocation8 + $0x240] ss:$24 sps:$4 sm:$0xff]  }
 0x445   : > { %2609 = vmatprep.subr.bf16.mxu1 %v4832_v16  ;;  %v4908_v16 = vld [vmem:[#allocation8 + $0x248] ss:$24 sps:$4 sm:$0xff]  }
 0x447   : > { %2569 = vmatpush1.bf16.msra.mxu0 %v4827_v17  ;;  %v4913_v17 = vld [vmem:[#allocation8 + $0x274] ss:$24 sps:$4 sm:$0xff]  }
 0x448   : > { %2610 = vmatpush1.bf16.msra.mxu1 %v4830_v18  ;;  %3230 = vmatprep.subr.bf16.mxu0 %v4835_v19  ;;  %v4916_v18 = vld [vmem:[#allocation8 + $0x27c] ss:$24 sps:$4 sm:$0xff]   ;;  %v4911_v19 = vld [vmem:[#allocation8 + $0x270] ss:$24 sps:$4 sm:$0xff]  }
 0x449   : > { %3271 = vmatprep.subr.bf16.mxu1 %v4838_v20  ;;  %v4914_v20 = vld [vmem:[#allocation8 + $0x278] ss:$24 sps:$4 sm:$0xff]  }
 0x44a   : > { %2571 = vmatmul.mubr.bf16.vlgmr.msra.gmra.mrb[16].mxu0 %v5562_v60  ;;  %v4853_v60 = vld [vmem:[#allocation8 + $0x94] ss:$24 sps:$4 sm:$0xff]  }
 0x44b   : > { %2612 = vmatmul.mubr.bf16.vlgmr.msra.gmra.mrb[16].mxu1 %v5573_v11  ;;  %3231 = vmatpush1.bf16.msra.mxu0 %v4833_v22  ;;  %v4856_v11 = vld [vmem:[#allocation8 + $0x9c] ss:$24 sps:$4 sm:$0xff]  }
 0x44c   : > { %3272 = vmatpush1.bf16.msra.mxu1 %v4836_v24  ;;  %3232 = vmatprep.subr.bf16.mxu0 %v4841_v57  ;;  %v4919_v22 = vld [vmem:[#allocation8 + $0x2a4] ss:$24 sps:$4 sm:$0xff]   ;;  %v4917_v57 = vld [vmem:[#allocation8 + $0x2a0] ss:$24 sps:$4 sm:$0xff]  }
 0x44d   : > { %3273 = vmatprep.subr.bf16.mxu1 %v4844_v25  ;;  %3262 = vmatprep.mubr.bf16.mxu0 %v5583_v63  ;;  %v4922_v24 = vld [vmem:[#allocation8 + $0x2ac] ss:$24 sps:$4 sm:$0xff]   ;;  %v4920_v25 = vld [vmem:[#allocation8 + $0x2a8] ss:$24 sps:$4 sm:$0xff]  }
 0x44e   : > { %3303 = vmatprep.mubr.bf16.mxu1 %v5583_v63 }
 0x44f   : > { %3233 = vmatpush1.bf16.msra.mxu0 %v4839_v26  ;;  %v4925_v26 = vld [vmem:[#allocation8 + $0x2d4] ss:$24 sps:$4 sm:$0xff]  }
 0x450   : > { %3274 = vmatpush1.bf16.msra.mxu1 %v4842_v27  ;;  %3234 = vmatprep.subr.bf16.mxu0 %v4847_v30  ;;  %v4928_v27 = vld [vmem:[#allocation8 + $0x2dc] ss:$24 sps:$4 sm:$0xff]   ;;  %v4923_v30 = vld [vmem:[#allocation8 + $0x2d0] ss:$24 sps:$4 sm:$0xff]  }
 0x451   : > { %3275 = vmatprep.subr.bf16.mxu1 %v4850_v33  ;;  %v5589_v33 = vld [vmem:[#allocation4] sm:$0xff] }
 0x453   : > { %3235 = vmatpush1.bf16.msra.mxu0 %v4845_v34  ;;  %v4926_v34 = vld [vmem:[#allocation8 + $0x2d8] ss:$24 sps:$4 sm:$0xff]  }
 0x454   : > { %3276 = vmatpush1.bf16.msra.mxu1 %v4848_v35  ;;  %3236 = vmatprep.subr.bf16.mxu0 %v4853_v60  ;;  %v4931_v35 = vld [vmem:[#allocation8 + $0x14] ss:$24 sps:$4 sm:$0xff]   ;;  %v5593_v60 = vpack.c.bf16 %v5589_v33, %v5589_v33 }
 0x455   : > { %3277 = vmatprep.subr.bf16.mxu1 %v4856_v11  ;;  %v4929_v11 = vld [vmem:[#allocation8 + $0x10] ss:$24 sps:$4 sm:$0xff]  }
 0x457   : > { %3237 = vmatpush1.bf16.msra.mxu0 %v4851_v36  ;;  %v4934_v36 = vld [vmem:[#allocation8 + $0x44] ss:$24 sps:$4 sm:$0xff]  }
 0x458   : > { %3278 = vmatpush1.bf16.msra.mxu1 %v4854_v37  ;;  %3238 = vmatprep.subr.bf16.mxu0 %v4859_v38  ;;  %v4932_v37 = vld [vmem:[#allocation8 + $0x40] ss:$24 sps:$4 sm:$0xff]   ;;  %v4937_v38 = vld [vmem:[#allocation8 + $0x74] ss:$24 sps:$4 sm:$0xff]  }
 0x459   : > { %3279 = vmatprep.subr.bf16.mxu1 %v4862_v40  ;;  %v4935_v40 = vld [vmem:[#allocation8 + $0x70] ss:$24 sps:$4 sm:$0xff]  }
 0x45b   : > { %3239 = vmatpush1.bf16.msra.mxu0 %v4857_v41  ;;  %v4940_v41 = vld [vmem:[#allocation8 + $0xa4] ss:$24 sps:$4 sm:$0xff]  }
 0x45c   : > { %3280 = vmatpush1.bf16.msra.mxu1 %v4860_v42  ;;  %3240 = vmatprep.subr.bf16.mxu0 %v4865_v43  ;;  %v4938_v42 = vld [vmem:[#allocation8 + $0xa0] ss:$24 sps:$4 sm:$0xff]   ;;  %v4943_v43 = vld [vmem:[#allocation8 + $0xd4] ss:$24 sps:$4 sm:$0xff]  }
 0x45d   : > { %3281 = vmatprep.subr.bf16.mxu1 %v4868_v44  ;;  %v4941_v44 = vld [vmem:[#allocation8 + $0xd0] ss:$24 sps:$4 sm:$0xff]  }
 0x45f   : > { %3241 = vmatpush1.bf16.msra.mxu0 %v4863_v45  ;;  %v4946_v45 = vld [vmem:[#allocation8 + $0x104] ss:$24 sps:$4 sm:$0xff]  }
 0x460   : > { %3282 = vmatpush1.bf16.msra.mxu1 %v4866_v46  ;;  %3242 = vmatprep.subr.bf16.mxu0 %v4871_v47  ;;  %v4944_v46 = vld [vmem:[#allocation8 + $0x100] ss:$24 sps:$4 sm:$0xff]   ;;  %v4949_v47 = vld [vmem:[#allocation8 + $0x134] ss:$24 sps:$4 sm:$0xff]  }
 0x461   : > { %3283 = vmatprep.subr.bf16.mxu1 %v4874_v48  ;;  %v4947_v48 = vld [vmem:[#allocation8 + $0x130] ss:$24 sps:$4 sm:$0xff]  }
 0x463   : > { %3243 = vmatpush1.bf16.msra.mxu0 %v4869_v50  ;;  %v4950_v50 = vld [vmem:[#allocation8 + $0x160] ss:$24 sps:$4 sm:$0xff]  }
 0x464   : > { %3284 = vmatpush1.bf16.msra.mxu1 %v4872_v51  ;;  %3244 = vmatprep.subr.bf16.mxu0 %v4877_v52  ;;  %v4955_v51 = vld [vmem:[#allocation8 + $0x194] ss:$24 sps:$4 sm:$0xff]   ;;  %v4953_v52 = vld [vmem:[#allocation8 + $0x190] ss:$24 sps:$4 sm:$0xff]  }
 0x465   : > { %3285 = vmatprep.subr.bf16.mxu1 %v4880_v53  ;;  %v4958_v53 = vld [vmem:[#allocation8 + $0x1c4] ss:$24 sps:$4 sm:$0xff]  }
 0x467   : > { %3245 = vmatpush1.bf16.msra.mxu0 %v4875_v54  ;;  %v4956_v54 = vld [vmem:[#allocation8 + $0x1c0] ss:$24 sps:$4 sm:$0xff]  }
 0x468   : > { %3286 = vmatpush1.bf16.msra.mxu1 %v4878_v55  ;;  %3246 = vmatprep.subr.bf16.mxu0 %v4883_v56  ;;  %v4961_v55 = vld [vmem:[#allocation8 + $0x1f4] ss:$24 sps:$4 sm:$0xff]   ;;  %v4959_v56 = vld [vmem:[#allocation8 + $0x1f0] ss:$24 sps:$4 sm:$0xff]  }
 0x469   : > { %3287 = vmatprep.subr.bf16.mxu1 %v4886_v58  ;;  %v4964_v58 = vld [vmem:[#allocation8 + $0x224] ss:$24 sps:$4 sm:$0xff]  }
 0x46b   : > { %3247 = vmatpush1.bf16.msra.mxu0 %v4881_v59  ;;  %v4962_v59 = vld [vmem:[#allocation8 + $0x220] ss:$24 sps:$4 sm:$0xff]  }
 0x46c   : > { %3288 = vmatpush1.bf16.msra.mxu1 %v4884_v61  ;;  %3248 = vmatprep.subr.bf16.mxu0 %v4889_v62  ;;  %v4967_v61 = vld [vmem:[#allocation8 + $0x254] ss:$24 sps:$4 sm:$0xff]   ;;  %v4965_v62 = vld [vmem:[#allocation8 + $0x250] ss:$24 sps:$4 sm:$0xff]  }
 0x46d   : > { %3289 = vmatprep.subr.bf16.mxu1 %v4892_v0  ;;  %v4970_v0 = vld [vmem:[#allocation8 + $0x284] ss:$24 sps:$4 sm:$0xff]  }
 0x46f   : > { %3249 = vmatpush1.bf16.msra.mxu0 %v4887_v1  ;;  %v4968_v1 = vld [vmem:[#allocation8 + $0x280] ss:$24 sps:$4 sm:$0xff]  }
 0x470   : > { %3290 = vmatpush1.bf16.msra.mxu1 %v4890_v2  ;;  %3250 = vmatprep.subr.bf16.mxu0 %v4895_v3  ;;  %v4973_v2 = vld [vmem:[#allocation8 + $0x2b4] ss:$24 sps:$4 sm:$0xff]   ;;  %v4971_v3 = vld [vmem:[#allocation8 + $0x2b0] ss:$24 sps:$4 sm:$0xff]  }
 0x471   : > { %3291 = vmatprep.subr.bf16.mxu1 %v4898_v4  ;;  %v4976_v4 = vld [vmem:[#allocation8 + $0x2e4] ss:$24 sps:$4 sm:$0xff]  }
 0x473   : > { %3251 = vmatpush1.bf16.msra.mxu0 %v4893_v5  ;;  %v4974_v5 = vld [vmem:[#allocation8 + $0x2e0] ss:$24 sps:$4 sm:$0xff]  }
 0x474   : > { %3292 = vmatpush1.bf16.msra.mxu1 %v4896_v7  ;;  %3252 = vmatprep.subr.bf16.mxu0 %v4901_v8  ;;  %v4977_v7 = vld [vmem:[%s5809_s13 + $0x40] sm:$0xff]  }
 0x475   : > { %3293 = vmatprep.subr.bf16.mxu1 %v4904_v9  ;;  %v4978_v8 = vld [vmem:[%s5809_s13] sm:$0xff]   ;;  %v4979_v9 = vld [vmem:[%s5809_s13 + $0x48] sm:$0xff]  }
 0x477   : > { %3253 = vmatpush1.bf16.msra.mxu0 %v4899_v10  ;;  %v4980_v10 = vld [vmem:[%s5809_s13 + $0x8] sm:$0xff]  }
 0x478   : > { %3294 = vmatpush1.bf16.msra.mxu1 %v4902_v12  ;;  %3254 = vmatprep.subr.bf16.mxu0 %v4907_v13  ;;  %v1402_v12 = vsub.s32 4, %v5519_v39  ;;  %v5618_v13 = vld [vmem:[%s5876_s22] sm:$0x3f]  ;;  %s5085_s22 = scalar_lea.vmem %s3793_s10, 256 }
 0x479   : > { %3295 = vmatprep.subr.bf16.mxu1 %v4910_v14  ;;  %v1406_v14 = vsub.s32 5, %v5519_v39  ;;  %p5086_p13 = scmp.ne.s32.totalorder %s3793_s10, %s5085_s22 }
 0x47b   : > { %3255 = vmatpush1.bf16.msra.mxu0 %v4905_v49  ;;  %v1403_v49 = vrot.slane %v5618_v13, %v1402_v12  ;;  %p5087_p4 = pnand %p5086_p13, %p5887_p1 }
 0x47c   : > { %3296 = vmatpush1.bf16.msra.mxu1 %v4908_v16  ;;  %3256 = vmatprep.subr.bf16.mxu0 %v4913_v17  ;;  %v1407_v16 = vrot.slane %v5618_v13, %v1406_v14 }
 0x47d   : > { %3297 = vmatprep.subr.bf16.mxu1 %v4916_v18  ;;  %p5088_p5 = pneg %p5087_p4 }
 0x47f   : > { %3257 = vmatpush1.bf16.msra.mxu0 %v4911_v19 }
 0x480   : > { %3298 = vmatpush1.bf16.msra.mxu1 %v4914_v20  ;;  %3258 = vmatprep.subr.bf16.mxu0 %v4919_v22 }
 0x481   : > { %3299 = vmatprep.subr.bf16.mxu1 %v4922_v24 }
 0x483   : > { %3259 = vmatpush1.bf16.msra.mxu0 %v4917_v57 }
 0x484   : > { %3300 = vmatpush1.bf16.msra.mxu1 %v4920_v25  ;;  %3260 = vmatprep.subr.bf16.mxu0 %v4925_v26  ;;  %v4981_v25 = vld [vmem:[%s5809_s13 + $0x50] sm:$0xff]  }
 0x485   : > { %3301 = vmatprep.subr.bf16.mxu1 %v4928_v27 }
 0x487   : > { %3261 = vmatpush1.bf16.msra.mxu0 %v4923_v30 }
 0x488   : > { %3302 = vmatpush1.bf16.msra.mxu1 %v4926_v34  ;;  %3312 = vmatprep.subr.bf16.mxu0 %v4931_v35  ;;  %v4982_v34 = vld [vmem:[%s5809_s13 + $0x10] sm:$0xff]  }
 0x489   : > { %4347 = vmatprep.subr.bf16.mxu1 %v4977_v7 }
 0x48a   : > { %3263 = vmatmul.mubr.bf16.vlgmr.msra.gmra.mrb[12].mxu0 %v5593_v60 }
 0x48b   : > { %3304 = vmatmul.mubr.bf16.vlgmr.msra.gmra.mrb[12].mxu1 %v5593_v60  ;;  %3313 = vmatpush1.bf16.msra.mxu0 %v4929_v11  ;;  %v4983_v11 = vld [vmem:[%s5809_s13 + $0x58] sm:$0xff]  }
 0x48c   : > { %3314 = vmatprep.subr.bf16.mxu0 %v4934_v36  ;;  %3344 = vmatprep.mubr.bf16.mxu0 %v5583_v63  ;;  %v4952_v63 = vld [vmem:[#allocation8 + $0x164] ss:$24 sps:$4 sm:$0xff]  }
 0x48d   : > { %4348 = vmatpush3.bf16.msra.mxu1 %v4978_v8  ;;  %v4984_v36 = vld [vmem:[%s5809_s13 + $0x18] sm:$0xff]  }
 0x48e   : > { %4349 = vmatprep.subr.bf16.mxu1 %v4979_v9 }
 0x48f   : > { %3315 = vmatpush1.bf16.msra.mxu0 %v4932_v37  ;;  %v4985_v37 = vld [vmem:[%s5809_s13 + $0x60] sm:$0xff]  }
 0x490   : > { %3316 = vmatprep.subr.bf16.mxu0 %v4937_v38  ;;  %v4986_v38 = vld [vmem:[%s5809_s13 + $0x20] sm:$0xff]  }
 0x491   : > { %4350 = vmatpush3.bf16.msra.mxu1 %v4980_v10 }
 0x492   : > { %4351 = vmatprep.subr.bf16.mxu1 %v4981_v25 }
 0x493   : > { %3317 = vmatpush1.bf16.msra.mxu0 %v4935_v40  ;;  %v4987_v40 = vld [vmem:[%s5809_s13 + $0x68] sm:$0xff]  }
 0x494   : > { %3318 = vmatprep.subr.bf16.mxu0 %v4940_v41  ;;  %v4988_v41 = vld [vmem:[%s5809_s13 + $0x28] sm:$0xff]  }
 0x495   : > { %4352 = vmatpush3.bf16.msra.mxu1 %v4982_v34 }
 0x496   : > { %4353 = vmatprep.subr.bf16.mxu1 %v4983_v11 }
 0x497   : > { %3319 = vmatpush1.bf16.msra.mxu0 %v4938_v42  ;;  %v4989_v42 = vld [vmem:[%s5809_s13 + $0x70] sm:$0xff]  }
 0x498   : > { %3320 = vmatprep.subr.bf16.mxu0 %v4943_v43  ;;  %v4990_v43 = vld [vmem:[%s5809_s13 + $0x30] sm:$0xff]  }
 0x499   : > { %4354 = vmatpush3.bf16.msra.mxu1 %v4984_v36 }
 0x49a   : > { %4355 = vmatprep.subr.bf16.mxu1 %v4985_v37 }
 0x49b   : > { %3321 = vmatpush1.bf16.msra.mxu0 %v4941_v44  ;;  %v4991_v44 = vld [vmem:[%s5809_s13 + $0x78] sm:$0xff]  }
 0x49c   : > { %3322 = vmatprep.subr.bf16.mxu0 %v4946_v45  ;;  %v4992_v45 = vld [vmem:[%s5809_s13 + $0x38] sm:$0xff]  }
 0x49d   : > { %4356 = vmatpush3.bf16.msra.mxu1 %v4986_v38 }
 0x49e   : > { %4357 = vmatprep.subr.bf16.mxu1 %v4987_v40 }
 0x49f   : > { %3323 = vmatpush1.bf16.msra.mxu0 %v4944_v46 }
 0x4a0   : > { %3324 = vmatprep.subr.bf16.mxu0 %v4949_v47 }
 0x4a1   : > { %4358 = vmatpush3.bf16.msra.mxu1 %v4988_v41 }
 0x4a2   : > { %4359 = vmatprep.subr.bf16.mxu1 %v4989_v42 }
 0x4a3   : > { %3325 = vmatpush1.bf16.msra.mxu0 %v4947_v48 }
 0x4a4   : > { %3326 = vmatprep.subr.bf16.mxu0 %v4952_v63 }
 0x4a5   : > { %4360 = vmatpush3.bf16.msra.mxu1 %v4990_v43 }
 0x4a6   : > { %4361 = vmatprep.subr.bf16.mxu1 %v4991_v44 }
 0x4a7   : > { %3327 = vmatpush1.bf16.msra.mxu0 %v4950_v50 }
 0x4a8   : > { %3328 = vmatprep.subr.bf16.mxu0 %v4955_v51 }
 0x4a9   : > { %4362 = vmatpush3.bf16.msra.mxu1 %v4992_v45 }
 0x4aa   : > { %4392 = vmatprep.subr.bf16.mxu1 %v5193_v6 }
 0x4ab   : > { %3329 = vmatpush1.bf16.msra.mxu0 %v4953_v52 }
 0x4ac   : > { %3330 = vmatprep.subr.bf16.mxu0 %v4958_v53 }
 0x4af   : > { %3331 = vmatpush1.bf16.msra.mxu0 %v4956_v54  ;;  %v2718_v54 = vld [vmem:[%s5877_s29] sm:$0x3f] }
 0x4b0   : > { %3332 = vmatprep.subr.bf16.mxu0 %v4961_v55  ;;  %v1387_v55 = vrot.slane %v5618_v13, %v5540_v28 }
 0x4b3   : > { %3333 = vmatpush1.bf16.msra.mxu0 %v4959_v56  ;;  %v2723_v56 = vrot.slane %v2718_v54, %v5540_v28  ;;  %v2735_v28 = vrot.slane %v2718_v54, %v5552_v32 }
 0x4b4   : > { %3334 = vmatprep.subr.bf16.mxu0 %v4964_v58  ;;  %v1391_v58 = vrot.slane %v5618_v13, %v5549_v31 }
 0x4b7   : > { %3335 = vmatpush1.bf16.msra.mxu0 %v4962_v59  ;;  %v2727_v59 = vrot.slane %v2718_v54, %v5549_v31 }
 0x4b8   : > { %3336 = vmatprep.subr.bf16.mxu0 %v4967_v61  ;;  %v4418_v61 = vadd.f32 %v2723_v56, %v1387_v55  ;;  %v4998_v55 = vld [vmem:[%s5878_s20 + $0x28] sm:$0xff]   ;;  %v4999_v56 = vld [vmem:[%s5878_s20 + $0x30] sm:$0xff]  }
 0x4bb   : > { %3337 = vmatpush1.bf16.msra.mxu0 %v4965_v62  ;;  %v4420_v62 = vadd.f32 %v2727_v59, %v1391_v58  ;;  %v5000_v58 = vld [vmem:[%s5878_s20 + $0x38] sm:$0xff]   ;;  %v3700_v59 = vld [vmem:[%s5879_s16] sm:$0xf]  ;;  %s5091_s16 = scalar_lea.vmem %s5090_s15, 512 }
 0x4bc   : > { %3338 = vmatprep.subr.bf16.mxu0 %v4970_v0  ;;  %p5093_p7 = scmp.lt.s32.totalorder %s5091_s16, %s5085_s22 }
 0x4be   : > { %p5094_p8 = por %p5093_p7, %p5092_p6 }
 0x4bf   : > { %3339 = vmatpush1.bf16.msra.mxu0 %v4968_v1 }
 0x4c0   : > { %3340 = vmatprep.subr.bf16.mxu0 %v4973_v2  ;;  %v1395_v2 = vrot.slane %v5618_v13, %v5543_v29  ;;  %p5095_p11 = pnand %p5094_p8, %p5088_p5 }
 0x4c3   : > { %3341 = vmatpush1.bf16.msra.mxu0 %v4971_v3  ;;  %v2731_v3 = vrot.slane %v2718_v54, %v5543_v29 }
 0x4c4   : > { %3342 = vmatprep.subr.bf16.mxu0 %v4976_v4 }
 0x4c5   : > { %v4422_v8 = vadd.f32 %v2731_v3, %v1395_v2 }
 0x4c7   : > { %3343 = vmatpush1.bf16.msra.mxu0 %v4974_v5  ;;  %v1399_v5 = vrot.slane %v5618_v13, %v5552_v32  ;;  %v2739_v32 = vrot.slane %v2718_v54, %v1402_v12 }
 0x4c8   : > { %4412 = vmatprep.subr.bf16.mxu0 %v5193_v6 }
 0x4c9   : > { %v4424_v9 = vadd.f32 %v2735_v28, %v1399_v5 }
 0x4ca   : > { %3345 = vmatmul.mubr.bf16.vlgmr.msra.gmra.mrb[20].mxu0 %v5593_v60 }
 0x4cb   : > { %4414 = vmatprep.mubr.msk.bf16.mxu0 %vm5194_vm2, %v5193_v6 }
 0x51d   : > { %v2572_v17 = vpop.f32.mrb[16].mxu0 }
 0x51e   : > { %v2573_v18 = vadd.f32 %v2572_v17, %v1403_v49  ;;  %v2613_v19 = vpop.f32.mrb[16].mxu1  ;;  %v2574_v20 = vpop.f32.mrb[17].mxu0 }
 0x51f   : > { %v2575_v22 = vadd.f32 %v2574_v20, %v1407_v16  ;;  %v2615_v24 = vpop.f32.mrb[17].mxu1  ;;  %v2576_v57 = vpop.f32.mrb[18].mxu0 }
 0x520   : > { %v5630_v26 = vadd.f32 %v2613_v19, %v2573_v18  ;;  %v2617_v27 = vpop.f32.mrb[18].mxu1  ;;  %v2577_v30 = vpop.f32.mrb[19].mxu0 }
 0x521   : > { %v5635_v35 = vadd.f32 %v2615_v24, %v2575_v22  ;;  %v2618_v60 = vpop.f32.mrb[19].mxu1  ;;  %v2743_v22 = vrot.slane %v2718_v54, %v1406_v14  ;;  %v4997_v54 = vld [vmem:[%s5878_s20 + $0x20] sm:$0xff]  }
 0x55d   : > { %v3264_v46 = vpop.f32.mrb[12].mxu0 }
 0x55e   : > { %v3305_v47 = vpop.f32.mrb[12].mxu1  ;;  %v3266_v48 = vpop.f32.mrb[13].mxu0  ;;  %v4419_v0 = vadd.f32 %v4418_v61, %v3264_v46  ;;  %v3708_v61 = vsel %vm3706_vm10, %v3700_v59, 0 }
 0x55f   : > { %v3307_v63 = vpop.f32.mrb[13].mxu1  ;;  %v3268_v50 = vpop.f32.mrb[14].mxu0  ;;  %v4421_v1 = vadd.f32 %v4420_v62, %v3266_v48  ;;  %v4423_v31 = vadd.f32 %v4422_v8, %v3305_v47  ;;  %4413 = vmatpush3.bf16.msra.mxu0 %v3708_v61 }
 0x560   : > { %v3309_v51 = vpop.f32.mrb[14].mxu1  ;;  %v3269_v52 = vpop.f32.mrb[15].mxu0  ;;  %v4305_v4 = vmul.f32 -1.442695, %v4419_v0  ;;  %v4425_v10 = vadd.f32 %v4424_v9, %v3307_v63  ;;  %v4309_v0 = vld [vmem:[%s5880_s28] ss:$0 sm:$0xff] }
 0x561   : > { %v3310_v53 = vpop.f32.mrb[15].mxu1  ;;  %v4306_v7 = vmul.f32 -1.442695, %v4421_v1  ;;  %v4307_v49 = vmul.f32 -1.442695, %v4423_v31  ;;  %v4993_v51 = vld [vmem:[%s5878_s20] sm:$0xff]   ;;  %v3693_v31 = vpop.permute.xlu0 %3692 }
 0x562   : > { %5009 = vpow2.f32 %v4305_v4  ;;  %v4308_v16 = vmul.f32 -1.442695, %v4425_v10  ;;  %v4996_v53 = vld [vmem:[%s5878_s20 + $0x18] sm:$0xff]   ;;  %v4326_v9 = vld [vmem:[%s5881_s23] ss:$0 sm:$0xff] }
 0x563   : > { %5011 = vpow2.f32 %v4306_v7  ;;  %v3687_v7 = vpop.permute.xlu1 %3686 }
 0x564   : > { %5013 = vpow2.f32 %v4307_v49  ;;  %v3695_v10 = vsel %vm885_vm4, %v5512_v23, %v3687_v7 }
 0x565   : > { %5015 = vpow2.f32 %v4308_v16 }
 0x567   : > { %v3690_v8 = vpop.permute.xlu1 %3689 }
 0x568   : > { %v3696_v16 = vsel %vm787_vm3, %v3695_v10, %v3690_v8 }
 0x56c   : > { %v5010_v17 = vpop.eup %5009 }
 0x56d   : > { %v5012_v18 = vpop.eup %5011  ;;  %v3361_v29 = vadd.f32 1.0, %v5010_v17 }
 0x56e   : > { %v3362_v19 = vadd.f32 1.0, %v5012_v18  ;;  %v5014_v13 = vpop.eup %5013 }
 0x56f   : > { %5017 = vrcp.f32 %v3361_v29  ;;  %v5016_v20 = vpop.eup %5015  ;;  %v3375_v24 = vadd.f32 1.0, %v5014_v13  ;;  %v3698_v29 = vsel %vm3697_vm11, %v3696_v16, %v3693_v31 }
 0x570   : > { %5019 = vrcp.f32 %v3362_v19  ;;  %v3376_v57 = vadd.f32 1.0, %v5016_v20 }
 0x571   : > { %5021 = vrcp.f32 %v3375_v24 }
 0x572   : > { %5023 = vrcp.f32 %v3376_v57 }
 0x579   : > { %v5018_v34 = vpop.eup %5017 }
 0x57a   : > { %v5020_v36 = vpop.eup %5019 }
 0x57b   : > { %v5022_v39 = vpop.eup %5021 }
 0x57c   : > { %v5024_v14 = vpop.eup %5023  ;;  %v3387_v42 = vsub.f32 1.0, %v5022_v39  ;;  %v3391_v47 = vmul.f32 %v5022_v39, %v5589_v33  ;;  %v4994_v33 = vld [vmem:[%s5878_s20 + $0x8] sm:$0xff]  }
 0x57d   : > { %v3388_v44 = vsub.f32 1.0, %v5024_v14  ;;  %v3392_v63 = vmul.f32 %v5024_v14, %v5579_v21  ;;  %v4995_v21 = vld [vmem:[%s5878_s20 + $0x10] sm:$0xff]  }
 0x59d   : > { %v3346_v25 = vpop.f32.mrb[20].mxu0 }
 0x59e   : > { %v3347_v27 = vadd.f32 %v3346_v25, %v2739_v32  ;;  %v3348_v30 = vpop.f32.mrb[21].mxu0 }
 0x59f   : > { %v3349_v60 = vadd.f32 %v3348_v30, %v2743_v22  ;;  %v3350_v11 = vpop.f32.mrb[22].mxu0 }
 0x5a0   : > { %v3381_v37 = vmul.f32 %v5018_v34, %v3347_v27  ;;  %v3351_v38 = vpop.f32.mrb[23].mxu0 }
 0x5a1   : > { %v3382_v40 = vmul.f32 %v5020_v36, %v3349_v60 }
 0x5a2   : > { %v3383_v41 = vadd.f32 %v3381_v37, %v5630_v26 }
 0x5a3   : > { %v3384_v12 = vadd.f32 %v3382_v40, %v5635_v35 }
 0x5a4   : > { %5025 = vtanh.f32 %v3383_v41 }
 0x5a5   : > { %5027 = vtanh.f32 %v3384_v12 }
 0x5ae   : > { %v5026_v43 = vpop.eup %5025 }
 0x5af   : > { %v5028_v45 = vpop.eup %5027  ;;  %v3389_v46 = vmul.f32 %v5026_v43, %v3387_v42 }
 0x5b0   : > { %v3390_v48 = vmul.f32 %v5028_v45, %v3388_v44 }
 0x5b1   : > { %v3393_v50 = vadd.f32 %v3391_v47, %v3389_v46 }
 0x5b2   : > { %v3394_v26 = vadd.f32 %v3392_v63, %v3390_v48 }
 0x5b3   : > { %3753 = vst [vmem:[#allocation4] sm:$0xff] %v3393_v50  ;;  %3757 = vst [vmem:[%s5478_s1] sm:$0xff] %v3393_v50  ;;  %v3427_v52 = vpack.c.bf16 %v3393_v50, %v3393_v50 }
 0x5b4   : > { %v3428_v35 = vpack.c.bf16 %v3394_v26, %v3394_v26  ;;  %3754 = vst [vmem:[#allocation4 + $0x8] sm:$0xff] %v3394_v26  ;;  %3758 = vst [vmem:[%s5478_s1 + $0x8] sm:$0xff] %v3394_v26 }
 0x5b6   : > { %3564 = vmatprep.mubr.bf16.mxu1 %v3428_v35 }
 0x5b7   : > { %3565 = vmatmul.mubr.bf16.vlgmr.msra.gmra.mrb[20].mxu1 %v3427_v52 }
 0x5b8   : > { %4393 = vmatpush3.bf16.msra.mxu1 %v4993_v51  ;;  %4408 = vmatprep.mubr.msk.bf16.mxu1 %vm5194_vm2, %v5193_v6 }
 0x5b9   : > { %4394 = vmatprep.subr.bf16.mxu1 %v5193_v6 }
 0x5bc   : > { %4395 = vmatpush3.bf16.msra.mxu1 %v4994_v33 }
 0x5bd   : > { %4396 = vmatprep.subr.bf16.mxu1 %v5193_v6 }
 0x5c0   : > { %4397 = vmatpush3.bf16.msra.mxu1 %v4995_v21 }
 0x5c1   : > { %4398 = vmatprep.subr.bf16.mxu1 %v5193_v6 }
 0x5c4   : > { %4399 = vmatpush3.bf16.msra.mxu1 %v4996_v53 }
 0x5c5   : > { %4400 = vmatprep.subr.bf16.mxu1 %v5193_v6 }
 0x5c8   : > { %4401 = vmatpush3.bf16.msra.mxu1 %v4997_v54 }
 0x5c9   : > { %4402 = vmatprep.subr.bf16.mxu1 %v5193_v6 }
 0x5cc   : > { %4403 = vmatpush3.bf16.msra.mxu1 %v4998_v55 }
 0x5cd   : > { %4404 = vmatprep.subr.bf16.mxu1 %v5193_v6 }
 0x5d0   : > { %4405 = vmatpush3.bf16.msra.mxu1 %v4999_v56 }
 0x5d1   : > { %4406 = vmatprep.subr.bf16.mxu1 %v5193_v6 }
 0x5d4   : > { %4407 = vmatpush3.bf16.msra.mxu1 %v5000_v58 }
 0x68a   : > { %v4363_v62 = vpop.f32.mrb[20].mxu1 }
 0x68b   : > { %v4364_v1 = vpop.f32.mrb[21].mxu1 }
 0x68c   : > { %v4365_v2 = vadd.f32 %v4364_v1, %v4363_v62  ;;  %v4366_v6 = vpop.f32.mrb[22].mxu1 }
 0x68d   : > { %v4367_v3 = vpop.f32.mrb[23].mxu1 }
 0x68e   : > { %v3567_v4 = vadd.f32 %v4365_v2, %v4309_v0 }
 0x690   : > { %v3572_v5 = vmax.f32 %v3567_v4, 0.0 }
 0x692   : > { %v3589_v28 = vpack.c.bf16 %v3572_v5, %v3572_v5 }
 0x694   : > { %4409 = vmatmul.mubr.bf16.vlgmr.msra.gmra.mrb[24].mxu1 %v3589_v28 }
 0x767   : > { %v3679_v49 = vpop.f32.mrb[24].mxu1 }
 0x768   : > { %v3680_v17 = vadd.f32 %v4326_v9, %v3679_v49  ;;  %v4410_v18 = vpop.f32.mrb[25].mxu1 }
 0x769   : > { %v3682_v19 = vpop.f32.mrb[26].mxu1 }
 0x76a   : > { %v3699_v13 = vmul.f32 %v3698_v29, %v3680_v17  ;;  %v4411_v20 = vpop.f32.mrb[27].mxu1 }
 0x76c   : > { %v3701_v32 = vpack.c.bf16 %v3699_v13, %v3699_v13 }
 0x76e   : > { %4415 = vmatmul.mubr.msk.bf16.vlgmr.msra.gmra.mrb[24].mxu0 %vm3702_vm12, %v3701_v32 }
 0x76f   : > { %5098 = shalt.err (!%p5095_p11)
}
 0x770   : > { %s5099_s1 = scalar_lea.hbm %s5742_s9, 256  ;;  %s5103_s28 = scalar_lea.hbm %s5885_s30, 512 }
 0x771   : > { %p5100_p12 = scmp.ne.s32.totalorder %s5742_s9, %s5099_s1  ;;  %p5104_p0 = scmp.lt.u32.totalorder %s5742_s9, %s5885_s30 }
 0x772   : > { %p5105_p2 = scmp.lt.u32.totalorder %s5103_s28, %s5099_s1  ;;  %p5107_p13 = scmp.lt.u32.totalorder %s5099_s1, %s5742_s9 }
 0x773   : > { %p5101_p3 = pnand %p5100_p12, %p5887_p1 }
 0x774   : > { %p5106_p10 = por %p5105_p2, %p5104_p0 }
 0x775   : > { %p5102_p9 = pneg %p5101_p3 }
 0x776   : > { %p5108_p4 = por %p5107_p13, %p5106_p10 }
 0x778   : > { %p5109_p5 = pnand %p5108_p4, %p5102_p9 }
 0x77a   : > { %5112 = shalt.err (!%p5109_p5)
}
 0x77b   : > { %4450 = dma.vmem_to_hbm [thread:$0]  (%p5887_p1), %s3793_s10, 256, %s5742_s9, %s3772_s12  }
 0x841   : > { %v3744_v23 = vpop.f32.mrb[24].mxu0 }
 0x842   : > { %v3750_v22 = vadd.f32 %v3744_v23, %v5497_v15  ;;  %v4416_v24 = vpop.f32.mrb[25].mxu0 }
 0x843   : > { %v3747_v57 = vpop.f32.mrb[26].mxu0 }
 0x844   : > { %3751 = vst.msk [vmem:[#allocation2] sm:$0xff] %vm787_vm3, %v3750_v22  ;;  %3755 = vst.msk [vmem:[%s5469_s2] sm:$0xff] %vm787_vm3, %v3750_v22  ;;  %v4417_v25 = vpop.f32.mrb[27].mxu0 }
 0x845 PF: > { %s5888_s23 = sld [smem:[#allocation20_spill]]  ;;  %s5889_s17 = sld [smem:[#allocation14_spill]] }
 0x846   : > { %s5890_s21 = sld [smem:[#allocation24_spill]] }
 0x84b   : > { %p4467_p6 = scmp.ge.s32.totalorder %s5888_s23, 2  ;;  %s3822_s0 = sand.u32 1, %s5889_s17  }
 0x84c   : > { %p5891_p7 = scmp.ne.s32.totalorder %s5890_s21, 0  ;;  %s3823_s3 = scalar_lea.sflag [#allocation7], %s3822_s0 }
 0x84e   : > { %p4460_p8 = pnand %p4467_p6, %p5891_p7 }
 0x850   : > { %5154 = dma.done.wait (!%p4460_p8), %s3823_s3, 256  }
 0x851   : > { %5156 = vsyncadd (!%p4460_p8), %s3823_s3, 4294967040  ;;  %s36_s26 = sadd.s32 1, %s5888_s23   ;;  %s5892_s1 = sld [smem:[#allocation15_spill]] }
 0x852   : > { %p33_p1 = scmp.ge.s32.totalorder %s36_s26, 14   ;;  %s5893_s22 = sld [smem:[#allocation16_spill]] }
 0x853   : > { %s5894_s23 = sld [smem:[#allocation25_spill]]  ;;  %s5895_s24 = sld [smem:[#allocation18_spill]] }
 0x854   : > { %s5896_s2 = sld [smem:[#allocation19_spill]]  ;;  %s5897_s25 = sld [smem:[#allocation21_spill]] }
 0x855   : > { %s5898_s3 = sld [smem:[#allocation23_spill]]  ;;  %35 = sbr.rel (!%p33_p1) target bundleno = 22 (0x16), region = 173 }
 0x85c   :  { %3828 = vsyncpa [#allocation6], 1 }
 0x85d   :  { %3830 = vsyncpa [#allocation6 + $0x1], 1 }
 0x85e   :  { %3831 = vsyncpa [#allocation9], 1 }
 0x85f   :  { %3832 = vsyncpa [#allocation7], 1 }
 0x860   :  { %3834 = vsyncpa [#allocation7 + $0x1], 1 }

</bundles_post_ra>
